<compile_context>
chip_gen: v6e
topology: v6e:2x2x1
jax: 0.10.0
libtpu: 0.0.40
codegen_flags: <defaults>
</compile_context>

<pallas_src>
import functools

import jax
import jax.numpy as jnp
from jax.experimental import pallas as pl
from jax.experimental.pallas import tpu as pltpu


def capsule_routing_kernel(x_ref, w_ref, out_ref, *, num_capsules, dim_capsule,
                           num_routing_iters, eps=1e-8):
    # TODO(synk): `squash` is imported but not defined in the reference file;
    # using the standard Sabour et al. (2017) squash over the last dim.
    N, Dc = num_capsules, dim_capsule

    xt = x_ref[...]                       # (P, BT, D_in)    bf16
    wt = w_ref[...]                       # (P, D_in, N*Dc)  bf16, lane-dense
    P, BT = xt.shape[0], xt.shape[1]

    # ---- prediction vectors on the MXU (batched over prev-capsule axis p) ----
    # u_hat[p, b, n*Dc + d] = sum_k x[b, p, k] * W[n, p, k, d]
    u_hat = jax.lax.dot_general(
        xt, wt,
        dimension_numbers=(((2,), (1,)), ((0,), (0,))),
        preferred_element_type=jnp.float32)            # (P, BT, N*Dc) f32, 128 lanes

    # Static per-output-capsule views (groups of Dc lanes), sliced once.
    u_n = [u_hat[:, :, n * Dc:(n + 1) * Dc] for n in range(N)]   # each (P, BT, Dc)

    # ---- dynamic routing; logits carry no D_out axis ----
    b_log = jnp.zeros((P, BT, N), jnp.float32)
    v_n = None
    for it in range(num_routing_iters):
        # softmax over the prev-capsule axis p (leading axis -> cheap vreg reduce)
        m = jnp.max(b_log, axis=0, keepdims=True)                  # (1, BT, N)
        e = jnp.exp(b_log - m)                                     # (P, BT, N)
        c = e * pl.reciprocal(jnp.sum(e, axis=0, keepdims=True), approx=True)

        v_n = []
        for n in range(N):
            # s[b, :] = sum_p c[p, b, n] * u_hat[p, b, n, :]
            s = jnp.sum(c[:, :, n:n + 1] * u_n[n], axis=0)         # (BT, Dc)
            # squash over the output-capsule coordinate axis
            sq = jnp.sum(s * s, axis=-1, keepdims=True)            # (BT, 1)
            scale = (sq * pl.reciprocal(1.0 + sq, approx=True)
                     * jax.lax.rsqrt(sq + eps))
            v_n.append(s * scale)                                  # (BT, Dc)

        if it != num_routing_iters - 1:
            # db[p, b, n] = sum_d v[b, n, d] * u_hat[p, b, n, d]
            db = jnp.concatenate(
                [jnp.sum(v_n[n][None, :, :] * u_n[n], axis=-1, keepdims=True)
                 for n in range(N)], axis=-1)                      # (P, BT, N)
            b_log = b_log + db

    out_ref[...] = jnp.concatenate(v_n, axis=-1)                   # (BT, N*Dc) lane-dense


def capsule_forward(x, W, num_routing_iters=3, block_b=128):
    """Pallas Capsule forward. x: (B, P, D_in), W: (N, P, D_in, D_out)."""
    B, P, D_in = x.shape
    N, P2, D_in2, Dc = W.shape
    assert (P, D_in) == (P2, D_in2)
    assert num_routing_iters >= 1
    ND = N * Dc

    # One-time layout plumbing (outside the kernel):
    #   x -> (P, B, D_in)    : prev-capsule axis becomes the dot_general batch dim
    #   W -> (P, D_in, N*Dc) : lane-dense MXU RHS (last dim = 128 here)
    # bf16 halves DMA bytes and hits the bf16 MXU path on v5e/v6e/v7x; the
    # accumulation and all routing math stay f32 (v5e has no bf16 VPU/EUP).
    xt = jnp.transpose(x, (1, 0, 2)).astype(jnp.bfloat16)
    wt = jnp.transpose(W, (1, 2, 0, 3)).reshape(P, D_in, ND).astype(jnp.bfloat16)

    # Batch tiling: whole batch in one grid step when small, otherwise blocks of
    # `block_b` rows (multiple of 8) to amortize the ~0.35us/step grid overhead.
    # block_b=128 keeps per-block VMEM ~1 MiB, safe for v7x (64 MiB) as well as
    # v5e/v6e (128 MiB); sweep larger blocks on v5e/v6e for very large B.
    bt = B if B <= block_b else block_b
    n_blocks = pl.cdiv(B, bt)
    b_pad = n_blocks * bt
    if b_pad != B:
        xt = jnp.pad(xt, ((0, 0), (0, b_pad - B), (0, 0)))   # zero rows -> v = 0

    kernel = functools.partial(
        capsule_routing_kernel, num_capsules=N, dim_capsule=Dc,
        num_routing_iters=num_routing_iters)

    out = pl.pallas_call(
        kernel,
        out_shape=jax.ShapeDtypeStruct((b_pad, ND), jnp.float32),
        grid=(n_blocks,),
        in_specs=[
            pl.BlockSpec((P, bt, D_in), lambda i: (0, i, 0)),   # batch block of x
            # constant block index -> W stays resident, not re-DMA'd per step
            pl.BlockSpec((P, D_in, ND), lambda i: (0, 0, 0)),
        ],
        out_specs=pl.BlockSpec((bt, ND), lambda i: (i, 0)),      # lane-dense output
        compiler_params=pltpu.CompilerParams(
            dimension_semantics=("parallel",)),
    )(xt, wt)

    return out[:B].reshape(B, N, Dc)


def _capsule_reference(x, W, num_routing_iters=3, eps=1e-8):
    # Pure-JAX mirror of the PyTorch forward (b keeps its redundant D_out axis,
    # exactly like the torch code). u_hat uses the same bf16-in / f32-acc as the
    # kernel's MXU matmul so the comparison is apples-to-apples.
    u_hat = jnp.einsum('bpd,npde->bnpe',
                       x.astype(jnp.bfloat16), W.astype(jnp.bfloat16),
                       preferred_element_type=jnp.float32)       # (B, N, P, D_out)
    b = jnp.zeros_like(u_hat)
    v = None
    for i in range(1, num_routing_iters + 1):
        c = jax.nn.softmax(b, axis=2)
        s = jnp.sum(c * u_hat, axis=2, keepdims=True)            # (B, N, 1, D_out)
        sq = jnp.sum(s * s, axis=-1, keepdims=True)
        v = (sq / (1.0 + sq)) * s * jax.lax.rsqrt(sq + eps)
        if i != num_routing_iters:
            db = jnp.sum(v * u_hat, axis=-1, keepdims=True)
            b = b + db
    return jnp.squeeze(v, axis=2)                                # (B, N, D_out)


if __name__ == "__main__":
    # Module config: prev_num_capsules=8, prev_dim_capsule=16,
    #                num_capsules=4, dim_capsule=32, num_routing_iters=3
    B, P, D_in, N, Dc = 2, 8, 16, 4, 32
    key = jax.random.PRNGKey(0)
    kx, kw = jax.random.split(key)
    x = jax.random.normal(kx, (B, P, D_in), dtype=jnp.float32)
    # self.W = Parameter(torch.randn(N, P, D_in, D_out)) -> standard normal init
    W = jax.random.normal(kw, (N, P, D_in, Dc), dtype=jnp.float32)

    v = capsule_forward(x, W, num_routing_iters=3)
    v = jax.block_until_ready(v)
    assert v.shape == (B, N, Dc)

    v_ref = _capsule_reference(x, W, num_routing_iters=3)
    # tolerance covers the approx-reciprocal (EUP) and bf16-MXU paths
    assert jnp.allclose(v, v_ref, atol=2e-2, rtol=2e-2), \
        float(jnp.max(jnp.abs(v - v_ref)))

    print("KERNEL_OK")
</pallas_src>

<mosaic_0001>
module attributes {stable_mosaic.version = 11 : i64} {
  func.func @capsule_routing_kernel(%arg0: i32, %arg1: memref<8x2x16xbf16, #tpu.memory_space<vmem>>, %arg2: memref<8x16x128xbf16, #tpu.memory_space<vmem>>, %arg3: memref<2x128xf32, #tpu.memory_space<vmem>>) attributes {dimension_semantics = [#tpu.dimension_semantics<parallel>], iteration_bounds = array<i64: 1>, scalar_prefetch = 0 : i64, scratch_operands = 0 : i64, tpu.core_type = #tpu.core_type<tc>, window_params = [{transform_indices = @transform_0, window_bounds = array<i64: 8, 2, 16>}, {pipeline_mode = #tpu.pipeline_mode<synchronous>, transform_indices = @transform_1, window_bounds = array<i64: 8, 16, 128>}, {transform_indices = @transform_2, window_bounds = array<i64: 2, 128>}]} {
    %c0 = arith.constant 0 : index
    %c0_0 = arith.constant 0 : index
    %c0_1 = arith.constant 0 : index
    %0 = vector.load %arg1[%c0, %c0_0, %c0_1] : memref<8x2x16xbf16, #tpu.memory_space<vmem>>, vector<8x2x16xbf16>
    %c0_2 = arith.constant 0 : index
    %c0_3 = arith.constant 0 : index
    %c0_4 = arith.constant 0 : index
    %1 = vector.load %arg2[%c0_2, %c0_3, %c0_4] : memref<8x16x128xbf16, #tpu.memory_space<vmem>>, vector<8x16x128xbf16>
    %cst = arith.constant dense<0.000000e+00> : vector<8x2x128xf32>
    %2 = tpu.matmul %0, %1, %cst {dimension_numbers = #tpu.dot_dimension_numbers<[2], [1], [1], [2], [0, 0, 0, 1, 1, 2], [0], [0]>} : vector<8x2x16xbf16>, vector<8x16x128xbf16>, vector<8x2x128xf32> -> vector<8x2x128xf32>
    %3 = vector.extract_strided_slice %2 {offsets = [0, 0, 0], sizes = [8, 2, 32], strides = [1, 1, 1]} : vector<8x2x128xf32> to vector<8x2x32xf32>
    %4 = vector.extract_strided_slice %2 {offsets = [0, 0, 32], sizes = [8, 2, 32], strides = [1, 1, 1]} : vector<8x2x128xf32> to vector<8x2x32xf32>
    %5 = vector.extract_strided_slice %2 {offsets = [0, 0, 64], sizes = [8, 2, 32], strides = [1, 1, 1]} : vector<8x2x128xf32> to vector<8x2x32xf32>
    %6 = vector.extract_strided_slice %2 {offsets = [0, 0, 96], sizes = [8, 2, 32], strides = [1, 1, 1]} : vector<8x2x128xf32> to vector<8x2x32xf32>
    %cst_5 = arith.constant 0.000000e+00 : f32
    %7 = vector.broadcast %cst_5 : f32 to vector<8x2x4xf32>
    %cst_6 = arith.constant dense<0xFF800000> : vector<2x4xf32>
    %8 = vector.multi_reduction <maximumf>, %7, %cst_6 [0] : vector<8x2x4xf32> to vector<2x4xf32>
    %9 = vector.shape_cast %8 : vector<2x4xf32> to vector<1x2x4xf32>
    %10 = vector.broadcast %9 : vector<1x2x4xf32> to vector<8x2x4xf32>
    %11 = arith.subf %7, %10 : vector<8x2x4xf32>
    %12 = math.exp %11 : vector<8x2x4xf32>
    %cst_7 = arith.constant dense<0.000000e+00> : vector<2x4xf32>
    %13 = vector.multi_reduction <add>, %12, %cst_7 [0] : vector<8x2x4xf32> to vector<2x4xf32>
    %14 = vector.shape_cast %13 : vector<2x4xf32> to vector<1x2x4xf32>
    %15 = tpu.reciprocal %14 {approx = true} : vector<1x2x4xf32> -> vector<1x2x4xf32>
    %16 = vector.broadcast %15 : vector<1x2x4xf32> to vector<8x2x4xf32>
    %17 = arith.mulf %12, %16 : vector<8x2x4xf32>
    %18 = vector.extract_strided_slice %17 {offsets = [0, 0, 0], sizes = [8, 2, 1], strides = [1, 1, 1]} : vector<8x2x4xf32> to vector<8x2x1xf32>
    %19 = vector.broadcast %18 : vector<8x2x1xf32> to vector<8x2x32xf32>
    %20 = arith.mulf %19, %3 : vector<8x2x32xf32>
    %cst_8 = arith.constant dense<0.000000e+00> : vector<2x32xf32>
    %21 = vector.multi_reduction <add>, %20, %cst_8 [0] : vector<8x2x32xf32> to vector<2x32xf32>
    %22 = arith.mulf %21, %21 : vector<2x32xf32>
    %cst_9 = arith.constant dense<0.000000e+00> : vector<2xf32>
    %23 = vector.multi_reduction <add>, %22, %cst_9 [1] : vector<2x32xf32> to vector<2xf32>
    %24 = vector.shape_cast %23 : vector<2xf32> to vector<2x1xf32>
    %cst_10 = arith.constant 1.000000e+00 : f32
    %25 = vector.broadcast %cst_10 : f32 to vector<2x1xf32>
    %26 = arith.addf %25, %24 : vector<2x1xf32>
    %27 = tpu.reciprocal %26 {approx = true} : vector<2x1xf32> -> vector<2x1xf32>
    %28 = arith.mulf %24, %27 : vector<2x1xf32>
    %cst_11 = arith.constant 9.99999993E-9 : f32
    %29 = vector.broadcast %cst_11 : f32 to vector<2x1xf32>
    %30 = arith.addf %24, %29 : vector<2x1xf32>
    %31 = math.rsqrt %30 : vector<2x1xf32>
    %32 = arith.mulf %28, %31 : vector<2x1xf32>
    %33 = vector.broadcast %32 : vector<2x1xf32> to vector<2x32xf32>
    %34 = arith.mulf %21, %33 : vector<2x32xf32>
    %35 = vector.extract_strided_slice %17 {offsets = [0, 0, 1], sizes = [8, 2, 1], strides = [1, 1, 1]} : vector<8x2x4xf32> to vector<8x2x1xf32>
    %36 = vector.broadcast %35 : vector<8x2x1xf32> to vector<8x2x32xf32>
    %37 = arith.mulf %36, %4 : vector<8x2x32xf32>
    %cst_12 = arith.constant dense<0.000000e+00> : vector<2x32xf32>
    %38 = vector.multi_reduction <add>, %37, %cst_12 [0] : vector<8x2x32xf32> to vector<2x32xf32>
    %39 = arith.mulf %38, %38 : vector<2x32xf32>
    %cst_13 = arith.constant dense<0.000000e+00> : vector<2xf32>
    %40 = vector.multi_reduction <add>, %39, %cst_13 [1] : vector<2x32xf32> to vector<2xf32>
    %41 = vector.shape_cast %40 : vector<2xf32> to vector<2x1xf32>
    %cst_14 = arith.constant 1.000000e+00 : f32
    %42 = vector.broadcast %cst_14 : f32 to vector<2x1xf32>
    %43 = arith.addf %42, %41 : vector<2x1xf32>
    %44 = tpu.reciprocal %43 {approx = true} : vector<2x1xf32> -> vector<2x1xf32>
    %45 = arith.mulf %41, %44 : vector<2x1xf32>
    %cst_15 = arith.constant 9.99999993E-9 : f32
    %46 = vector.broadcast %cst_15 : f32 to vector<2x1xf32>
    %47 = arith.addf %41, %46 : vector<2x1xf32>
    %48 = math.rsqrt %47 : vector<2x1xf32>
    %49 = arith.mulf %45, %48 : vector<2x1xf32>
    %50 = vector.broadcast %49 : vector<2x1xf32> to vector<2x32xf32>
    %51 = arith.mulf %38, %50 : vector<2x32xf32>
    %52 = vector.extract_strided_slice %17 {offsets = [0, 0, 2], sizes = [8, 2, 1], strides = [1, 1, 1]} : vector<8x2x4xf32> to vector<8x2x1xf32>
    %53 = vector.broadcast %52 : vector<8x2x1xf32> to vector<8x2x32xf32>
    %54 = arith.mulf %53, %5 : vector<8x2x32xf32>
    %cst_16 = arith.constant dense<0.000000e+00> : vector<2x32xf32>
    %55 = vector.multi_reduction <add>, %54, %cst_16 [0] : vector<8x2x32xf32> to vector<2x32xf32>
    %56 = arith.mulf %55, %55 : vector<2x32xf32>
    %cst_17 = arith.constant dense<0.000000e+00> : vector<2xf32>
    %57 = vector.multi_reduction <add>, %56, %cst_17 [1] : vector<2x32xf32> to vector<2xf32>
    %58 = vector.shape_cast %57 : vector<2xf32> to vector<2x1xf32>
    %cst_18 = arith.constant 1.000000e+00 : f32
    %59 = vector.broadcast %cst_18 : f32 to vector<2x1xf32>
    %60 = arith.addf %59, %58 : vector<2x1xf32>
    %61 = tpu.reciprocal %60 {approx = true} : vector<2x1xf32> -> vector<2x1xf32>
    %62 = arith.mulf %58, %61 : vector<2x1xf32>
    %cst_19 = arith.constant 9.99999993E-9 : f32
    %63 = vector.broadcast %cst_19 : f32 to vector<2x1xf32>
    %64 = arith.addf %58, %63 : vector<2x1xf32>
    %65 = math.rsqrt %64 : vector<2x1xf32>
    %66 = arith.mulf %62, %65 : vector<2x1xf32>
    %67 = vector.broadcast %66 : vector<2x1xf32> to vector<2x32xf32>
    %68 = arith.mulf %55, %67 : vector<2x32xf32>
    %69 = vector.extract_strided_slice %17 {offsets = [0, 0, 3], sizes = [8, 2, 1], strides = [1, 1, 1]} : vector<8x2x4xf32> to vector<8x2x1xf32>
    %70 = vector.broadcast %69 : vector<8x2x1xf32> to vector<8x2x32xf32>
    %71 = arith.mulf %70, %6 : vector<8x2x32xf32>
    %cst_20 = arith.constant dense<0.000000e+00> : vector<2x32xf32>
    %72 = vector.multi_reduction <add>, %71, %cst_20 [0] : vector<8x2x32xf32> to vector<2x32xf32>
    %73 = arith.mulf %72, %72 : vector<2x32xf32>
    %cst_21 = arith.constant dense<0.000000e+00> : vector<2xf32>
    %74 = vector.multi_reduction <add>, %73, %cst_21 [1] : vector<2x32xf32> to vector<2xf32>
    %75 = vector.shape_cast %74 : vector<2xf32> to vector<2x1xf32>
    %cst_22 = arith.constant 1.000000e+00 : f32
    %76 = vector.broadcast %cst_22 : f32 to vector<2x1xf32>
    %77 = arith.addf %76, %75 : vector<2x1xf32>
    %78 = tpu.reciprocal %77 {approx = true} : vector<2x1xf32> -> vector<2x1xf32>
    %79 = arith.mulf %75, %78 : vector<2x1xf32>
    %cst_23 = arith.constant 9.99999993E-9 : f32
    %80 = vector.broadcast %cst_23 : f32 to vector<2x1xf32>
    %81 = arith.addf %75, %80 : vector<2x1xf32>
    %82 = math.rsqrt %81 : vector<2x1xf32>
    %83 = arith.mulf %79, %82 : vector<2x1xf32>
    %84 = vector.broadcast %83 : vector<2x1xf32> to vector<2x32xf32>
    %85 = arith.mulf %72, %84 : vector<2x32xf32>
    %86 = vector.shape_cast %34 : vector<2x32xf32> to vector<1x2x32xf32>
    %87 = vector.broadcast %86 : vector<1x2x32xf32> to vector<8x2x32xf32>
    %88 = arith.mulf %87, %3 : vector<8x2x32xf32>
    %cst_24 = arith.constant dense<0.000000e+00> : vector<8x2xf32>
    %89 = vector.multi_reduction <add>, %88, %cst_24 [2] : vector<8x2x32xf32> to vector<8x2xf32>
    %90 = vector.shape_cast %89 : vector<8x2xf32> to vector<8x2x1xf32>
    %91 = vector.shape_cast %51 : vector<2x32xf32> to vector<1x2x32xf32>
    %92 = vector.broadcast %91 : vector<1x2x32xf32> to vector<8x2x32xf32>
    %93 = arith.mulf %92, %4 : vector<8x2x32xf32>
    %cst_25 = arith.constant dense<0.000000e+00> : vector<8x2xf32>
    %94 = vector.multi_reduction <add>, %93, %cst_25 [2] : vector<8x2x32xf32> to vector<8x2xf32>
    %95 = vector.shape_cast %94 : vector<8x2xf32> to vector<8x2x1xf32>
    %96 = vector.shape_cast %68 : vector<2x32xf32> to vector<1x2x32xf32>
    %97 = vector.broadcast %96 : vector<1x2x32xf32> to vector<8x2x32xf32>
    %98 = arith.mulf %97, %5 : vector<8x2x32xf32>
    %cst_26 = arith.constant dense<0.000000e+00> : vector<8x2xf32>
    %99 = vector.multi_reduction <add>, %98, %cst_26 [2] : vector<8x2x32xf32> to vector<8x2xf32>
    %100 = vector.shape_cast %99 : vector<8x2xf32> to vector<8x2x1xf32>
    %101 = vector.shape_cast %85 : vector<2x32xf32> to vector<1x2x32xf32>
    %102 = vector.broadcast %101 : vector<1x2x32xf32> to vector<8x2x32xf32>
    %103 = arith.mulf %102, %6 : vector<8x2x32xf32>
    %cst_27 = arith.constant dense<0.000000e+00> : vector<8x2xf32>
    %104 = vector.multi_reduction <add>, %103, %cst_27 [2] : vector<8x2x32xf32> to vector<8x2xf32>
    %105 = vector.shape_cast %104 : vector<8x2xf32> to vector<8x2x1xf32>
    %106 = tpu.concatenate %90, %95, %100, %105 in 2 : vector<8x2x1xf32>, vector<8x2x1xf32>, vector<8x2x1xf32>, vector<8x2x1xf32> -> vector<8x2x4xf32>
    %107 = arith.addf %7, %106 : vector<8x2x4xf32>
    %cst_28 = arith.constant dense<0xFF800000> : vector<2x4xf32>
    %108 = vector.multi_reduction <maximumf>, %107, %cst_28 [0] : vector<8x2x4xf32> to vector<2x4xf32>
    %109 = vector.shape_cast %108 : vector<2x4xf32> to vector<1x2x4xf32>
    %110 = vector.broadcast %109 : vector<1x2x4xf32> to vector<8x2x4xf32>
    %111 = arith.subf %107, %110 : vector<8x2x4xf32>
    %112 = math.exp %111 : vector<8x2x4xf32>
    %cst_29 = arith.constant dense<0.000000e+00> : vector<2x4xf32>
    %113 = vector.multi_reduction <add>, %112, %cst_29 [0] : vector<8x2x4xf32> to vector<2x4xf32>
    %114 = vector.shape_cast %113 : vector<2x4xf32> to vector<1x2x4xf32>
    %115 = tpu.reciprocal %114 {approx = true} : vector<1x2x4xf32> -> vector<1x2x4xf32>
    %116 = vector.broadcast %115 : vector<1x2x4xf32> to vector<8x2x4xf32>
    %117 = arith.mulf %112, %116 : vector<8x2x4xf32>
    %118 = vector.extract_strided_slice %117 {offsets = [0, 0, 0], sizes = [8, 2, 1], strides = [1, 1, 1]} : vector<8x2x4xf32> to vector<8x2x1xf32>
    %119 = vector.broadcast %118 : vector<8x2x1xf32> to vector<8x2x32xf32>
    %120 = arith.mulf %119, %3 : vector<8x2x32xf32>
    %cst_30 = arith.constant dense<0.000000e+00> : vector<2x32xf32>
    %121 = vector.multi_reduction <add>, %120, %cst_30 [0] : vector<8x2x32xf32> to vector<2x32xf32>
    %122 = arith.mulf %121, %121 : vector<2x32xf32>
    %cst_31 = arith.constant dense<0.000000e+00> : vector<2xf32>
    %123 = vector.multi_reduction <add>, %122, %cst_31 [1] : vector<2x32xf32> to vector<2xf32>
    %124 = vector.shape_cast %123 : vector<2xf32> to vector<2x1xf32>
    %cst_32 = arith.constant 1.000000e+00 : f32
    %125 = vector.broadcast %cst_32 : f32 to vector<2x1xf32>
    %126 = arith.addf %125, %124 : vector<2x1xf32>
    %127 = tpu.reciprocal %126 {approx = true} : vector<2x1xf32> -> vector<2x1xf32>
    %128 = arith.mulf %124, %127 : vector<2x1xf32>
    %cst_33 = arith.constant 9.99999993E-9 : f32
    %129 = vector.broadcast %cst_33 : f32 to vector<2x1xf32>
    %130 = arith.addf %124, %129 : vector<2x1xf32>
    %131 = math.rsqrt %130 : vector<2x1xf32>
    %132 = arith.mulf %128, %131 : vector<2x1xf32>
    %133 = vector.broadcast %132 : vector<2x1xf32> to vector<2x32xf32>
    %134 = arith.mulf %121, %133 : vector<2x32xf32>
    %135 = vector.extract_strided_slice %117 {offsets = [0, 0, 1], sizes = [8, 2, 1], strides = [1, 1, 1]} : vector<8x2x4xf32> to vector<8x2x1xf32>
    %136 = vector.broadcast %135 : vector<8x2x1xf32> to vector<8x2x32xf32>
    %137 = arith.mulf %136, %4 : vector<8x2x32xf32>
    %cst_34 = arith.constant dense<0.000000e+00> : vector<2x32xf32>
    %138 = vector.multi_reduction <add>, %137, %cst_34 [0] : vector<8x2x32xf32> to vector<2x32xf32>
    %139 = arith.mulf %138, %138 : vector<2x32xf32>
    %cst_35 = arith.constant dense<0.000000e+00> : vector<2xf32>
    %140 = vector.multi_reduction <add>, %139, %cst_35 [1] : vector<2x32xf32> to vector<2xf32>
    %141 = vector.shape_cast %140 : vector<2xf32> to vector<2x1xf32>
    %cst_36 = arith.constant 1.000000e+00 : f32
    %142 = vector.broadcast %cst_36 : f32 to vector<2x1xf32>
    %143 = arith.addf %142, %141 : vector<2x1xf32>
    %144 = tpu.reciprocal %143 {approx = true} : vector<2x1xf32> -> vector<2x1xf32>
    %145 = arith.mulf %141, %144 : vector<2x1xf32>
    %cst_37 = arith.constant 9.99999993E-9 : f32
    %146 = vector.broadcast %cst_37 : f32 to vector<2x1xf32>
    %147 = arith.addf %141, %146 : vector<2x1xf32>
    %148 = math.rsqrt %147 : vector<2x1xf32>
    %149 = arith.mulf %145, %148 : vector<2x1xf32>
    %150 = vector.broadcast %149 : vector<2x1xf32> to vector<2x32xf32>
    %151 = arith.mulf %138, %150 : vector<2x32xf32>
    %152 = vector.extract_strided_slice %117 {offsets = [0, 0, 2], sizes = [8, 2, 1], strides = [1, 1, 1]} : vector<8x2x4xf32> to vector<8x2x1xf32>
    %153 = vector.broadcast %152 : vector<8x2x1xf32> to vector<8x2x32xf32>
    %154 = arith.mulf %153, %5 : vector<8x2x32xf32>
    %cst_38 = arith.constant dense<0.000000e+00> : vector<2x32xf32>
    %155 = vector.multi_reduction <add>, %154, %cst_38 [0] : vector<8x2x32xf32> to vector<2x32xf32>
    %156 = arith.mulf %155, %155 : vector<2x32xf32>
    %cst_39 = arith.constant dense<0.000000e+00> : vector<2xf32>
    %157 = vector.multi_reduction <add>, %156, %cst_39 [1] : vector<2x32xf32> to vector<2xf32>
    %158 = vector.shape_cast %157 : vector<2xf32> to vector<2x1xf32>
    %cst_40 = arith.constant 1.000000e+00 : f32
    %159 = vector.broadcast %cst_40 : f32 to vector<2x1xf32>
    %160 = arith.addf %159, %158 : vector<2x1xf32>
    %161 = tpu.reciprocal %160 {approx = true} : vector<2x1xf32> -> vector<2x1xf32>
    %162 = arith.mulf %158, %161 : vector<2x1xf32>
    %cst_41 = arith.constant 9.99999993E-9 : f32
    %163 = vector.broadcast %cst_41 : f32 to vector<2x1xf32>
    %164 = arith.addf %158, %163 : vector<2x1xf32>
    %165 = math.rsqrt %164 : vector<2x1xf32>
    %166 = arith.mulf %162, %165 : vector<2x1xf32>
    %167 = vector.broadcast %166 : vector<2x1xf32> to vector<2x32xf32>
    %168 = arith.mulf %155, %167 : vector<2x32xf32>
    %169 = vector.extract_strided_slice %117 {offsets = [0, 0, 3], sizes = [8, 2, 1], strides = [1, 1, 1]} : vector<8x2x4xf32> to vector<8x2x1xf32>
    %170 = vector.broadcast %169 : vector<8x2x1xf32> to vector<8x2x32xf32>
    %171 = arith.mulf %170, %6 : vector<8x2x32xf32>
    %cst_42 = arith.constant dense<0.000000e+00> : vector<2x32xf32>
    %172 = vector.multi_reduction <add>, %171, %cst_42 [0] : vector<8x2x32xf32> to vector<2x32xf32>
    %173 = arith.mulf %172, %172 : vector<2x32xf32>
    %cst_43 = arith.constant dense<0.000000e+00> : vector<2xf32>
    %174 = vector.multi_reduction <add>, %173, %cst_43 [1] : vector<2x32xf32> to vector<2xf32>
    %175 = vector.shape_cast %174 : vector<2xf32> to vector<2x1xf32>
    %cst_44 = arith.constant 1.000000e+00 : f32
    %176 = vector.broadcast %cst_44 : f32 to vector<2x1xf32>
    %177 = arith.addf %176, %175 : vector<2x1xf32>
    %178 = tpu.reciprocal %177 {approx = true} : vector<2x1xf32> -> vector<2x1xf32>
    %179 = arith.mulf %175, %178 : vector<2x1xf32>
    %cst_45 = arith.constant 9.99999993E-9 : f32
    %180 = vector.broadcast %cst_45 : f32 to vector<2x1xf32>
    %181 = arith.addf %175, %180 : vector<2x1xf32>
    %182 = math.rsqrt %181 : vector<2x1xf32>
    %183 = arith.mulf %179, %182 : vector<2x1xf32>
    %184 = vector.broadcast %183 : vector<2x1xf32> to vector<2x32xf32>
    %185 = arith.mulf %172, %184 : vector<2x32xf32>
    %186 = vector.shape_cast %134 : vector<2x32xf32> to vector<1x2x32xf32>
    %187 = vector.broadcast %186 : vector<1x2x32xf32> to vector<8x2x32xf32>
    %188 = arith.mulf %187, %3 : vector<8x2x32xf32>
    %cst_46 = arith.constant dense<0.000000e+00> : vector<8x2xf32>
    %189 = vector.multi_reduction <add>, %188, %cst_46 [2] : vector<8x2x32xf32> to vector<8x2xf32>
    %190 = vector.shape_cast %189 : vector<8x2xf32> to vector<8x2x1xf32>
    %191 = vector.shape_cast %151 : vector<2x32xf32> to vector<1x2x32xf32>
    %192 = vector.broadcast %191 : vector<1x2x32xf32> to vector<8x2x32xf32>
    %193 = arith.mulf %192, %4 : vector<8x2x32xf32>
    %cst_47 = arith.constant dense<0.000000e+00> : vector<8x2xf32>
    %194 = vector.multi_reduction <add>, %193, %cst_47 [2] : vector<8x2x32xf32> to vector<8x2xf32>
    %195 = vector.shape_cast %194 : vector<8x2xf32> to vector<8x2x1xf32>
    %196 = vector.shape_cast %168 : vector<2x32xf32> to vector<1x2x32xf32>
    %197 = vector.broadcast %196 : vector<1x2x32xf32> to vector<8x2x32xf32>
    %198 = arith.mulf %197, %5 : vector<8x2x32xf32>
    %cst_48 = arith.constant dense<0.000000e+00> : vector<8x2xf32>
    %199 = vector.multi_reduction <add>, %198, %cst_48 [2] : vector<8x2x32xf32> to vector<8x2xf32>
    %200 = vector.shape_cast %199 : vector<8x2xf32> to vector<8x2x1xf32>
    %201 = vector.shape_cast %185 : vector<2x32xf32> to vector<1x2x32xf32>
    %202 = vector.broadcast %201 : vector<1x2x32xf32> to vector<8x2x32xf32>
    %203 = arith.mulf %202, %6 : vector<8x2x32xf32>
    %cst_49 = arith.constant dense<0.000000e+00> : vector<8x2xf32>
    %204 = vector.multi_reduction <add>, %203, %cst_49 [2] : vector<8x2x32xf32> to vector<8x2xf32>
    %205 = vector.shape_cast %204 : vector<8x2xf32> to vector<8x2x1xf32>
    %206 = tpu.concatenate %190, %195, %200, %205 in 2 : vector<8x2x1xf32>, vector<8x2x1xf32>, vector<8x2x1xf32>, vector<8x2x1xf32> -> vector<8x2x4xf32>
    %207 = arith.addf %107, %206 : vector<8x2x4xf32>
    %cst_50 = arith.constant dense<0xFF800000> : vector<2x4xf32>
    %208 = vector.multi_reduction <maximumf>, %207, %cst_50 [0] : vector<8x2x4xf32> to vector<2x4xf32>
    %209 = vector.shape_cast %208 : vector<2x4xf32> to vector<1x2x4xf32>
    %210 = vector.broadcast %209 : vector<1x2x4xf32> to vector<8x2x4xf32>
    %211 = arith.subf %207, %210 : vector<8x2x4xf32>
    %212 = math.exp %211 : vector<8x2x4xf32>
    %cst_51 = arith.constant dense<0.000000e+00> : vector<2x4xf32>
    %213 = vector.multi_reduction <add>, %212, %cst_51 [0] : vector<8x2x4xf32> to vector<2x4xf32>
    %214 = vector.shape_cast %213 : vector<2x4xf32> to vector<1x2x4xf32>
    %215 = tpu.reciprocal %214 {approx = true} : vector<1x2x4xf32> -> vector<1x2x4xf32>
    %216 = vector.broadcast %215 : vector<1x2x4xf32> to vector<8x2x4xf32>
    %217 = arith.mulf %212, %216 : vector<8x2x4xf32>
    %218 = vector.extract_strided_slice %217 {offsets = [0, 0, 0], sizes = [8, 2, 1], strides = [1, 1, 1]} : vector<8x2x4xf32> to vector<8x2x1xf32>
    %219 = vector.broadcast %218 : vector<8x2x1xf32> to vector<8x2x32xf32>
    %220 = arith.mulf %219, %3 : vector<8x2x32xf32>
    %cst_52 = arith.constant dense<0.000000e+00> : vector<2x32xf32>
    %221 = vector.multi_reduction <add>, %220, %cst_52 [0] : vector<8x2x32xf32> to vector<2x32xf32>
    %222 = arith.mulf %221, %221 : vector<2x32xf32>
    %cst_53 = arith.constant dense<0.000000e+00> : vector<2xf32>
    %223 = vector.multi_reduction <add>, %222, %cst_53 [1] : vector<2x32xf32> to vector<2xf32>
    %224 = vector.shape_cast %223 : vector<2xf32> to vector<2x1xf32>
    %cst_54 = arith.constant 1.000000e+00 : f32
    %225 = vector.broadcast %cst_54 : f32 to vector<2x1xf32>
    %226 = arith.addf %225, %224 : vector<2x1xf32>
    %227 = tpu.reciprocal %226 {approx = true} : vector<2x1xf32> -> vector<2x1xf32>
    %228 = arith.mulf %224, %227 : vector<2x1xf32>
    %cst_55 = arith.constant 9.99999993E-9 : f32
    %229 = vector.broadcast %cst_55 : f32 to vector<2x1xf32>
    %230 = arith.addf %224, %229 : vector<2x1xf32>
    %231 = math.rsqrt %230 : vector<2x1xf32>
    %232 = arith.mulf %228, %231 : vector<2x1xf32>
    %233 = vector.broadcast %232 : vector<2x1xf32> to vector<2x32xf32>
    %234 = arith.mulf %221, %233 : vector<2x32xf32>
    %235 = vector.extract_strided_slice %217 {offsets = [0, 0, 1], sizes = [8, 2, 1], strides = [1, 1, 1]} : vector<8x2x4xf32> to vector<8x2x1xf32>
    %236 = vector.broadcast %235 : vector<8x2x1xf32> to vector<8x2x32xf32>
    %237 = arith.mulf %236, %4 : vector<8x2x32xf32>
    %cst_56 = arith.constant dense<0.000000e+00> : vector<2x32xf32>
    %238 = vector.multi_reduction <add>, %237, %cst_56 [0] : vector<8x2x32xf32> to vector<2x32xf32>
    %239 = arith.mulf %238, %238 : vector<2x32xf32>
    %cst_57 = arith.constant dense<0.000000e+00> : vector<2xf32>
    %240 = vector.multi_reduction <add>, %239, %cst_57 [1] : vector<2x32xf32> to vector<2xf32>
    %241 = vector.shape_cast %240 : vector<2xf32> to vector<2x1xf32>
    %cst_58 = arith.constant 1.000000e+00 : f32
    %242 = vector.broadcast %cst_58 : f32 to vector<2x1xf32>
    %243 = arith.addf %242, %241 : vector<2x1xf32>
    %244 = tpu.reciprocal %243 {approx = true} : vector<2x1xf32> -> vector<2x1xf32>
    %245 = arith.mulf %241, %244 : vector<2x1xf32>
    %cst_59 = arith.constant 9.99999993E-9 : f32
    %246 = vector.broadcast %cst_59 : f32 to vector<2x1xf32>
    %247 = arith.addf %241, %246 : vector<2x1xf32>
    %248 = math.rsqrt %247 : vector<2x1xf32>
    %249 = arith.mulf %245, %248 : vector<2x1xf32>
    %250 = vector.broadcast %249 : vector<2x1xf32> to vector<2x32xf32>
    %251 = arith.mulf %238, %250 : vector<2x32xf32>
    %252 = vector.extract_strided_slice %217 {offsets = [0, 0, 2], sizes = [8, 2, 1], strides = [1, 1, 1]} : vector<8x2x4xf32> to vector<8x2x1xf32>
    %253 = vector.broadcast %252 : vector<8x2x1xf32> to vector<8x2x32xf32>
    %254 = arith.mulf %253, %5 : vector<8x2x32xf32>
    %cst_60 = arith.constant dense<0.000000e+00> : vector<2x32xf32>
    %255 = vector.multi_reduction <add>, %254, %cst_60 [0] : vector<8x2x32xf32> to vector<2x32xf32>
    %256 = arith.mulf %255, %255 : vector<2x32xf32>
    %cst_61 = arith.constant dense<0.000000e+00> : vector<2xf32>
    %257 = vector.multi_reduction <add>, %256, %cst_61 [1] : vector<2x32xf32> to vector<2xf32>
    %258 = vector.shape_cast %257 : vector<2xf32> to vector<2x1xf32>
    %cst_62 = arith.constant 1.000000e+00 : f32
    %259 = vector.broadcast %cst_62 : f32 to vector<2x1xf32>
    %260 = arith.addf %259, %258 : vector<2x1xf32>
    %261 = tpu.reciprocal %260 {approx = true} : vector<2x1xf32> -> vector<2x1xf32>
    %262 = arith.mulf %258, %261 : vector<2x1xf32>
    %cst_63 = arith.constant 9.99999993E-9 : f32
    %263 = vector.broadcast %cst_63 : f32 to vector<2x1xf32>
    %264 = arith.addf %258, %263 : vector<2x1xf32>
    %265 = math.rsqrt %264 : vector<2x1xf32>
    %266 = arith.mulf %262, %265 : vector<2x1xf32>
    %267 = vector.broadcast %266 : vector<2x1xf32> to vector<2x32xf32>
    %268 = arith.mulf %255, %267 : vector<2x32xf32>
    %269 = vector.extract_strided_slice %217 {offsets = [0, 0, 3], sizes = [8, 2, 1], strides = [1, 1, 1]} : vector<8x2x4xf32> to vector<8x2x1xf32>
    %270 = vector.broadcast %269 : vector<8x2x1xf32> to vector<8x2x32xf32>
    %271 = arith.mulf %270, %6 : vector<8x2x32xf32>
    %cst_64 = arith.constant dense<0.000000e+00> : vector<2x32xf32>
    %272 = vector.multi_reduction <add>, %271, %cst_64 [0] : vector<8x2x32xf32> to vector<2x32xf32>
    %273 = arith.mulf %272, %272 : vector<2x32xf32>
    %cst_65 = arith.constant dense<0.000000e+00> : vector<2xf32>
    %274 = vector.multi_reduction <add>, %273, %cst_65 [1] : vector<2x32xf32> to vector<2xf32>
    %275 = vector.shape_cast %274 : vector<2xf32> to vector<2x1xf32>
    %cst_66 = arith.constant 1.000000e+00 : f32
    %276 = vector.broadcast %cst_66 : f32 to vector<2x1xf32>
    %277 = arith.addf %276, %275 : vector<2x1xf32>
    %278 = tpu.reciprocal %277 {approx = true} : vector<2x1xf32> -> vector<2x1xf32>
    %279 = arith.mulf %275, %278 : vector<2x1xf32>
    %cst_67 = arith.constant 9.99999993E-9 : f32
    %280 = vector.broadcast %cst_67 : f32 to vector<2x1xf32>
    %281 = arith.addf %275, %280 : vector<2x1xf32>
    %282 = math.rsqrt %281 : vector<2x1xf32>
    %283 = arith.mulf %279, %282 : vector<2x1xf32>
    %284 = vector.broadcast %283 : vector<2x1xf32> to vector<2x32xf32>
    %285 = arith.mulf %272, %284 : vector<2x32xf32>
    %286 = tpu.concatenate %234, %251, %268, %285 in 1 : vector<2x32xf32>, vector<2x32xf32>, vector<2x32xf32>, vector<2x32xf32> -> vector<2x128xf32>
    %c0_68 = arith.constant 0 : index
    %c0_69 = arith.constant 0 : index
    %287 = vector.load %arg3[%c0_68, %c0_69] : memref<2x128xf32, #tpu.memory_space<vmem>>, vector<2x128xf32>
    tpu.vector_store %arg3[%c0_68, %c0_69], %286 {strides = array<i32>} : memref<2x128xf32, #tpu.memory_space<vmem>>, vector<2x128xf32>,
    return
  }
  func.func @transform_0(%arg0: i32) -> (i32, i32, i32) {
    %c0_i32 = arith.constant 0 : i32
    %c0_i32_0 = arith.constant 0 : i32
    %c0_i32_1 = arith.constant 0 : i32
    return %c0_i32, %arg0, %c0_i32_0 : i32, i32, i32
  }
  func.func @transform_1(%arg0: i32) -> (i32, i32, i32) {
    %c0_i32 = arith.constant 0 : i32
    %c0_i32_0 = arith.constant 0 : i32
    %c0_i32_1 = arith.constant 0 : i32
    %c0_i32_2 = arith.constant 0 : i32
    return %c0_i32, %c0_i32_0, %c0_i32_1 : i32, i32, i32
  }
  func.func @transform_2(%arg0: i32) -> (i32, i32) {
    %c0_i32 = arith.constant 0 : i32
    %c0_i32_0 = arith.constant 0 : i32
    return %arg0, %c0_i32 : i32, i32
  }
}

</mosaic_0001>

<bundles_post_ra>
// kernel: tpu_custom_call.1
= control target key start
LH: loop header
LB: loop body
LE: loop exit
PB: predicated region body
PF: predicated region fallthrough
CT: control target
= control target key end

     0   :  { %7 = vsyncpa [#allocation3], 0  ;;  %s2830_s0 = inlined_call_operand.hbm [shape: bf16[8,2,16], index: 0, kind: input, shape index: {}]   ;;  %s2831_s1 = inlined_call_operand.hbm [shape: bf16[8,16,128], index: 1, kind: input, shape index: {}]   ;;  %s2832_s2 = inlined_call_operand.hbm [shape: f32[2,128], index: 2, kind: output, shape index: {}]  }
   0x1   :  { %8 = vsyncpa [#allocation6], 0 }
   0x2   :  { %9 = vsyncpa [#allocation4], 0  ;;  %s2103_s9 = smov [#allocation2]  }
   0x3   :  { %s15_s10 = sshll.u32 %s2103_s9, 4  ;;  %s16_s10 = int_to_ptr.vmem [resolvable:$true] %s15_s10 }
   0x4   :  { %s2045_s11 = scalar_lea.vmem %s16_s10, 128  ;;  %p2050_p1 = scmp.lt.s32.totalorder %s16_s10, %s16_s10 }
   0x5   :  { %p2046_p0 = scmp.ne.s32.totalorder %s16_s10, %s2045_s11  ;;  %p2051_p2 = scmp.lt.s32.totalorder %s2045_s11, %s2045_s11 }
   0x7   :  { %p2052_p3 = por %p2051_p2, %p2050_p1 }
   0x9   :  { %p2053_p4 = pnand %p2052_p3, %p2046_p0 }
   0xb   :  { %2056 = shalt.err (!%p2053_p4)
}
   0xc   :  { %s2104_s12 = smov 16   ;;  %s2105_s13 = smov 1  }
   0xd   :  { %21 = dma.hbm_to_vmem [thread:$0]  %s2830_s0, 128, %s16_s10, [#allocation3], %s2104_s12, %s2104_s12, %s2105_s13  }
   0xe   :  { %s2106_s16 = smov [#allocation5]  }
   0xf   :  { %s27_s17 = sshll.u32 %s2106_s16, 4  ;;  %s28_s17 = int_to_ptr.vmem [resolvable:$true] %s27_s17 }
  0x10   :  { %s2065_s18 = scalar_lea.vmem %s28_s17, 1024  ;;  %p2070_p6 = scmp.lt.s32.totalorder %s28_s17, %s28_s17 }
  0x11   :  { %p2066_p5 = scmp.ne.s32.totalorder %s28_s17, %s2065_s18  ;;  %p2071_p7 = scmp.lt.s32.totalorder %s2065_s18, %s2065_s18 }
  0x13   :  { %p2072_p8 = por %p2071_p7, %p2070_p6 }
  0x15   :  { %p2073_p9 = pnand %p2072_p8, %p2066_p5 }
  0x17   :  { %2076 = shalt.err (!%p2073_p9)
}
  0x18   :  { %s2107_s19 = smov 64   ;;  %s2108_s20 = smov 4  }
  0x19   :  { %33 = dma.hbm_to_vmem [thread:$0]  %s2831_s1, 1024, %s28_s17, [#allocation6], %s2107_s19, %s2107_s19, %s2108_s20  }
  0x1a   :  { %2097 = dma.done.wait [#allocation3], 128  }
  0x1b   :  { %2098 = vsyncadd [#allocation3], 4294967168 }
  0x1c   :  { %2099 = dma.done.wait [#allocation6], 1024  }
  0x1d   :  { %2100 = vsyncadd [#allocation6], 4294966272  ;;  %v2109_v0 = vmov 0.0   ;;  %vm2110_vm0 = vmmov 0   ;;  %v1945_v1 = vld [vmem:[#allocation5] sm:$0xff]   ;;  %v1946_v2 = vld [vmem:[#allocation5 + $0x8] sm:$0xff]  }
  0x1e   :  { %1852 = vmatprep.subr.bf16.mxu0 %v2109_v0  ;;  %1858 = vmatprep.subr.bf16.mxu1 %v2109_v0  ;;  %vm71_vm1 = vcmask 130048   ;;  %v41_v3 = vld [vmem:[#allocation2] sm:$0x1]  ;;  %v42_v4 = vld [vmem:[#allocation2 + $0x1] sm:$0x1]  ;;  %v1947_v5 = vld [vmem:[#allocation5 + $0x10] sm:$0xff]  }
  0x1f   :  { %1854 = vmatprep.mubr.msk.bf16.mxu0 %vm2110_vm0, %v2109_v0  ;;  %1860 = vmatprep.mubr.msk.bf16.mxu1 %vm2110_vm0, %v2109_v0  ;;  %v1948_v6 = vld [vmem:[#allocation5 + $0x18] sm:$0xff]   ;;  %v1949_v8 = vld [vmem:[#allocation5 + $0x20] sm:$0xff]   ;;  %v1950_v10 = vld [vmem:[#allocation5 + $0x28] sm:$0xff]   ;;  %vm556_vm2 = vcmask 1042176   ;;  %vm494_vm3 = vcmask 517376   ;;  %vm525_vm4 = vcmask 779776  }
  0x20   :  { %1853 = vmatpush3.bf16.msra.mxu0 %v1945_v1  ;;  %1859 = vmatpush3.bf16.msra.mxu1 %v1946_v2  ;;  %v43_v7 = vld [vmem:[#allocation2 + $0x2] sm:$0x1]  ;;  %v44_v9 = vld [vmem:[#allocation2 + $0x3] sm:$0x1]  ;;  %v45_v11 = vld [vmem:[#allocation2 + $0x4] sm:$0x1] }
  0x21   :  { %1864 = vmatprep.subr.bf16.mxu0 %v2109_v0  ;;  %1870 = vmatprep.subr.bf16.mxu1 %v2109_v0  ;;  %v1951_v12 = vld [vmem:[#allocation5 + $0x30] sm:$0xff]   ;;  %v46_v13 = vld [vmem:[#allocation2 + $0x5] sm:$0x1]  ;;  %v47_v15 = vld [vmem:[#allocation2 + $0x6] sm:$0x1]  ;;  %s2111_s0 = smov 32  }
  0x22   :  { %v1952_v14 = vld [vmem:[#allocation5 + $0x38] sm:$0xff]   ;;  %s2112_s1 = smov 96   ;;  %vm467_vm5 = vcmask 254976   ;;  %vm811_vm6 = vcmask 7168   ;;  %vm820_vm7 = vcmask 15360   ;;  %vm829_vm8 = vcmask 23552  }
  0x23   :  { %1855 = vmatmul.mubr.msk.bf16.vlgmr.msra.gmra.mxu0 %vm71_vm1, %v41_v3  ;;  %1861 = vmatmul.mubr.msk.bf16.vlgmr.msra.gmra.mxu1 %vm71_vm1, %v42_v4  ;;  %v48_v16 = vld [vmem:[#allocation2 + $0x7] sm:$0x1]  ;;  %vm846_vm9 = vcmask 25600   ;;  %vm1797_vm10 = vcmask 261120   ;;  %vm1799_vm11 = vcmask 523264   ;;  %s2117_s23 = smov [#allocation7]  }
  0x24   :  { %1865 = vmatpush3.bf16.msra.mxu0 %v1947_v5  ;;  %1871 = vmatpush3.bf16.msra.mxu1 %v1948_v6  ;;  %s1810_s24 = sshll.u32 %s2117_s23, 4  ;;  %vm1801_vm12 = vcmask 785408   ;;  %s1811_s24 = int_to_ptr.vmem [resolvable:$true] %s1810_s24 }
  0x25   :  { %1866 = vmatprep.mubr.msk.bf16.mxu0 %vm2110_vm0, %v2109_v0  ;;  %1872 = vmatprep.mubr.msk.bf16.mxu1 %vm2110_vm0, %v2109_v0  ;;  %s2077_s25 = scalar_lea.vmem %s1811_s24, 32  ;;  %p2082_p11 = scmp.lt.s32.totalorder %s1811_s24, %s1811_s24 }
  0x26   :  { %1876 = vmatprep.subr.bf16.mxu0 %v2109_v0  ;;  %1882 = vmatprep.subr.bf16.mxu1 %v2109_v0  ;;  %p2078_p10 = scmp.ne.s32.totalorder %s1811_s24, %s2077_s25  ;;  %p2083_p12 = scmp.lt.s32.totalorder %s2077_s25, %s2077_s25 }
  0x28   :  { %p2084_p13 = por %p2083_p12, %p2082_p11 }
  0x2a   :  { %p2085_p0 = pnand %p2084_p13, %p2078_p10 }
  0x2b   :  { %1867 = vmatmul.mubr.msk.bf16.vlgmr.msra.gmra.mxu0 %vm71_vm1, %v43_v7  ;;  %1873 = vmatmul.mubr.msk.bf16.vlgmr.msra.gmra.mxu1 %vm71_vm1, %v44_v9 }
  0x2c   :  { %1877 = vmatpush3.bf16.msra.mxu0 %v1949_v8  ;;  %1883 = vmatpush3.bf16.msra.mxu1 %v1950_v10 }
  0x2d   :  { %1878 = vmatprep.mubr.msk.bf16.mxu0 %vm2110_vm0, %v2109_v0  ;;  %1884 = vmatprep.mubr.msk.bf16.mxu1 %vm2110_vm0, %v2109_v0 }
  0x2e   :  { %1888 = vmatprep.subr.bf16.mxu0 %v2109_v0  ;;  %1894 = vmatprep.subr.bf16.mxu1 %v2109_v0 }
  0x33   :  { %1879 = vmatmul.mubr.msk.bf16.vlgmr.msra.gmra.mxu0 %vm71_vm1, %v45_v11  ;;  %1885 = vmatmul.mubr.msk.bf16.vlgmr.msra.gmra.mxu1 %vm71_vm1, %v46_v13 }
  0x34   :  { %1889 = vmatpush3.bf16.msra.mxu0 %v1951_v12  ;;  %1895 = vmatpush3.bf16.msra.mxu1 %v1952_v14 }
  0x35   :  { %1890 = vmatprep.mubr.msk.bf16.mxu0 %vm2110_vm0, %v2109_v0  ;;  %1896 = vmatprep.mubr.msk.bf16.mxu1 %vm2110_vm0, %v2109_v0 }
  0x3b   :  { %1891 = vmatmul.mubr.msk.bf16.vlgmr.msra.gmra.mxu0 %vm71_vm1, %v47_v15  ;;  %1897 = vmatmul.mubr.msk.bf16.vlgmr.msra.gmra.mxu1 %vm71_vm1, %v48_v16 }
  0xe3   :  { %v2157_v17 = vpop.f32.mrf.mxu0  ;;  %v2159_v18 = vpop.f32.mrf.mxu1 }
  0xe4   :  { %v2162_v25 = vmul.f32 0.125, %v2157_v17  ;;  %v2165_v26 = vmul.f32 0.125, %v2159_v18 }
  0xe5   :  { %v1856_v19 = vpop.f32.mrf.mxu0  ;;  %v1862_v20 = vpop.f32.mrf.mxu1 }
  0xe6   :  { %v557_v32 = vsel %vm556_vm2, %v2162_v25, 0.0  ;;  %v558_v33 = vsel %vm556_vm2, %v2165_v26, 0.0  ;;  %v495_v34 = vsel %vm494_vm3, %v2162_v25, 0.0  ;;  %v496_v35 = vsel %vm494_vm3, %v2165_v26, 0.0 }
  0xe7   :  { %v112_v21 = vpop.f32.mrf.mxu0  ;;  %v161_v22 = vpop.f32.mrf.mxu1  ;;  %v526_v37 = vsel %vm525_vm4, %v2162_v25, 0.0  ;;  %v527_v38 = vsel %vm525_vm4, %v2165_v26, 0.0  ;;  %v559_v44 = vadd.f32 %v558_v33, %v557_v32  ;;  %v497_v45 = vadd.f32 %v496_v35, %v495_v34 }
  0xe8   :  { %v528_v48 = vadd.f32 %v527_v38, %v526_v37 }
  0xe9   :  { %v1857_v23 = vpop.f32.mrf.mxu0  ;;  %v1863_v24 = vpop.f32.mrf.mxu1 }
  0xeb   :  { %v2167_v27 = vpop.f32.mrf.mxu0  ;;  %v2169_v28 = vpop.f32.mrf.mxu1 }
  0xec   :  { %v2172_v29 = vmul.f32 0.125, %v2167_v27  ;;  %v2187_v40 = vmul.f32 0.125, %v2169_v28 }
  0xed   :  { %v1868_v30 = vpop.f32.mrf.mxu0  ;;  %v1874_v31 = vpop.f32.mrf.mxu1 }
  0xee   :  { %v560_v41 = vsel %vm556_vm2, %v2172_v29, 0.0  ;;  %v498_v42 = vsel %vm494_vm3, %v2172_v29, 0.0  ;;  %v529_v46 = vsel %vm525_vm4, %v2172_v29, 0.0  ;;  %v562_v54 = vsel %vm556_vm2, %v2187_v40, 0.0 }
  0xef   :  { %v210_v36 = vpop.f32.mrf.mxu0  ;;  %v259_v39 = vpop.f32.mrf.mxu1  ;;  %v561_v50 = vadd.f32 %v560_v41, %v559_v44  ;;  %v499_v51 = vadd.f32 %v498_v42, %v497_v45  ;;  %v500_v55 = vsel %vm494_vm3, %v2187_v40, 0.0  ;;  %v530_v56 = vadd.f32 %v529_v46, %v528_v48 }
  0xf0   :  { %v531_v58 = vsel %vm525_vm4, %v2187_v40, 0.0 }
  0xf1   :  { %v1869_v43 = vpop.f32.mrf.mxu0  ;;  %v1875_v47 = vpop.f32.mrf.mxu1  ;;  %v563_v0 = vadd.f32 %v562_v54, %v561_v50  ;;  %v501_v1 = vadd.f32 %v500_v55, %v499_v51  ;;  %v532_v4 = vadd.f32 %v531_v58, %v530_v56  ;;  %v468_v50 = vsel %vm467_vm5, %v2162_v25, 0.0 }
  0xf2   :  { %v469_v51 = vsel %vm467_vm5, %v2165_v26, 0.0  ;;  %v471_v54 = vsel %vm467_vm5, %v2172_v29, 0.0 }
  0xf3   :  { %v2195_v49 = vpop.f32.mrf.mxu0  ;;  %v2197_v52 = vpop.f32.mrf.mxu1  ;;  %v470_v55 = vadd.f32 %v469_v51, %v468_v50 }
  0xf4   :  { %v2200_v53 = vmul.f32 0.125, %v2195_v49  ;;  %v464_v60 = vmul.f32 0.125, %v2197_v52 }
  0xf5   :  { %v1880_v57 = vpop.f32.mrf.mxu0  ;;  %v1886_v59 = vpop.f32.mrf.mxu1  ;;  %v472_v56 = vadd.f32 %v471_v54, %v470_v55 }
  0xf6   :  { %v564_v61 = vsel %vm556_vm2, %v2200_v53, 0.0  ;;  %v502_v62 = vsel %vm494_vm3, %v2200_v53, 0.0  ;;  %v533_v2 = vsel %vm525_vm4, %v2200_v53, 0.0  ;;  %v566_v9 = vsel %vm556_vm2, %v464_v60, 0.0 }
  0xf7   :  { %v308_v63 = vpop.f32.mrf.mxu0  ;;  %v357_v3 = vpop.f32.mrf.mxu1  ;;  %v565_v6 = vadd.f32 %v564_v61, %v563_v0  ;;  %v503_v7 = vadd.f32 %v502_v62, %v501_v1  ;;  %v504_v10 = vsel %vm494_vm3, %v464_v60, 0.0  ;;  %v534_v11 = vadd.f32 %v533_v2, %v532_v4 }
  0xf8   :  { %v535_v13 = vsel %vm525_vm4, %v464_v60, 0.0  ;;  %v473_v57 = vsel %vm467_vm5, %v2187_v40, 0.0  ;;  %v475_v58 = vsel %vm467_vm5, %v2200_v53, 0.0  ;;  %v477_v62 = vsel %vm467_vm5, %v464_v60, 0.0 }
  0xf9   :  { %v1881_v5 = vpop.f32.mrf.mxu0  ;;  %v1887_v8 = vpop.f32.mrf.mxu1  ;;  %v567_v20 = vadd.f32 %v566_v9, %v565_v6  ;;  %v505_v21 = vadd.f32 %v504_v10, %v503_v7  ;;  %v536_v30 = vadd.f32 %v535_v13, %v534_v11  ;;  %v474_v59 = vadd.f32 %v473_v57, %v472_v56 }
  0xfb   :  { %v2217_v12 = vpop.f32.mrf.mxu0  ;;  %v2220_v14 = vpop.f32.mrf.mxu1  ;;  %v476_v61 = vadd.f32 %v475_v58, %v474_v59 }
  0xfc   :  { %v465_v15 = vmul.f32 0.125, %v2217_v12  ;;  %v466_v19 = vmul.f32 0.125, %v2220_v14 }
  0xfd   :  { %v1892_v16 = vpop.f32.mrf.mxu0  ;;  %v1898_v22 = vpop.f32.mrf.mxu1  ;;  %v478_v63 = vadd.f32 %v477_v62, %v476_v61 }
  0xfe   :  { %v568_v23 = vsel %vm556_vm2, %v465_v15, 0.0  ;;  %v506_v24 = vsel %vm494_vm3, %v465_v15, 0.0  ;;  %v537_v31 = vsel %vm525_vm4, %v465_v15, 0.0  ;;  %v570_v34 = vsel %vm556_vm2, %v466_v19, 0.0 }
  0xff   :  { %v406_v32 = vpop.f32.mrf.mxu0  ;;  %v569_v33 = vadd.f32 %v568_v23, %v567_v20  ;;  %v507_v35 = vadd.f32 %v506_v24, %v505_v21  ;;  %v508_v36 = vsel %vm494_vm3, %v466_v19, 0.0  ;;  %v455_v37 = vpop.f32.mrf.mxu1  ;;  %v538_v38 = vadd.f32 %v537_v31, %v536_v30 }
 0x100   :  { %v539_v39 = vsel %vm525_vm4, %v466_v19, 0.0  ;;  %v479_v25 = vsel %vm467_vm5, %v465_v15, 0.0  ;;  %v481_v26 = vsel %vm467_vm5, %v466_v19, 0.0 }
 0x101   :  { %v1893_v41 = vpop.f32.mrf.mxu0  ;;  %v2230_v42 = vadd.f32 %v570_v34, %v569_v33  ;;  %v2232_v43 = vadd.f32 %v508_v36, %v507_v35  ;;  %v1899_v44 = vpop.f32.mrf.mxu1  ;;  %v2238_v47 = vadd.f32 %v539_v39, %v538_v38  ;;  %v480_v0 = vadd.f32 %v479_v25, %v478_v63 }
 0x103   :  { %v572_v45 = vmul.f32 %v2230_v42, %v2230_v42  ;;  %v510_v46 = vmul.f32 %v2232_v43, %v2232_v43  ;;  %v541_v48 = vmul.f32 %v2238_v47, %v2238_v47  ;;  %v482_v1 = vadd.f32 %v481_v26, %v480_v0 }
 0x105   :  { %574 = vrot.lane.b32.xlu1 %v572_v45, %s2111_s0  ;;  %512 = vrot.lane.b32.xlu0 %v510_v46, %s2112_s1  ;;  %v483_v29 = vmul.f32 %v482_v1, %v482_v1 }
 0x107   :  { %v484_v2 = vsel %vm467_vm5, %v483_v29, 0.0 }
 0x109   :  { %543 = vrot.lane.b32.xlu0 %v541_v48, %s2107_s19 }
 0x129   :  { %485 = vadd.xlane.f32.xlu1 %v484_v2 }
 0x177   :  { %v575_v3 = vpop.permute.xlu1 %574  ;;  %v513_v40 = vpop.permute.xlu0 %512 }
 0x178   :  { %v515_v4 = vsel %vm467_vm5, %v513_v40, 0.0  ;;  %v577_v53 = vsel %vm467_vm5, %v575_v3, 0.0 }
 0x179   :  { %516 = vadd.xlane.f32.xlu0 %v515_v4  ;;  %578 = vadd.xlane.f32.xlu1 %v577_v53 }
 0x17b   :  { %v544_v60 = vpop.permute.xlu0 %543 }
 0x17c   :  { %v546_v5 = vsel %vm467_vm5, %v544_v60, 0.0 }
 0x17d   :  { %547 = vadd.xlane.f32.xlu0 %v546_v5 }
 0x1b2   :  { %v486_v6 = vpop.xlane.xlu1 %485 }
 0x1b3   :  { %v487_v7 = vadd.f32 1.0, %v486_v6  ;;  %v490_v8 = vadd.f32 1e-08, %v486_v6 }
 0x1b5   :  { %1953 = vrcp.f32 %v487_v7 }
 0x1b6   :  { %1955 = vrsqrt.f32 %v490_v8 }
 0x1c2   :  { %v1954_v9 = vpop.eup %1953 }
 0x1c3   :  { %v489_v10 = vmul.f32 %v1954_v9, %v486_v6  ;;  %v1956_v11 = vpop.eup %1955 }
 0x1c5   :  { %v492_v13 = vmul.f32 %v1956_v11, %v489_v10 }
 0x1c7   :  { %v493_v15 = vmul.f32 %v492_v13, %v482_v1 }
 0x1c9   :  { %v588_v16 = vmul.f32 %v493_v15, %v2159_v18  ;;  %v587_v19 = vmul.f32 %v493_v15, %v2157_v17  ;;  %v590_v22 = vmul.f32 %v493_v15, %v2169_v28  ;;  %v589_v23 = vmul.f32 %v493_v15, %v2167_v27 }
 0x1ca   :  { %v592_v31 = vmul.f32 %v493_v15, %v2197_v52  ;;  %v591_v32 = vmul.f32 %v493_v15, %v2195_v49  ;;  %v594_v35 = vmul.f32 %v493_v15, %v2220_v14  ;;  %v593_v36 = vmul.f32 %v493_v15, %v2217_v12 }
 0x1cb   :  { %v598_v20 = vsel %vm467_vm5, %v588_v16, 0.0  ;;  %v595_v21 = vsel %vm467_vm5, %v587_v19, 0.0  ;;  %v604_v24 = vsel %vm467_vm5, %v590_v22, 0.0  ;;  %v601_v30 = vsel %vm467_vm5, %v589_v23, 0.0 }
 0x1cc   :  { %599 = vadd.xlane.f32.xlu1 %v598_v20  ;;  %596 = vadd.xlane.f32.xlu0 %v595_v21  ;;  %v610_v33 = vsel %vm467_vm5, %v592_v31, 0.0  ;;  %v607_v34 = vsel %vm467_vm5, %v591_v32, 0.0  ;;  %v616_v37 = vsel %vm467_vm5, %v594_v35, 0.0  ;;  %v613_v38 = vsel %vm467_vm5, %v593_v36, 0.0 }
 0x1d0   :  { %605 = vadd.xlane.f32.xlu1 %v604_v24  ;;  %602 = vadd.xlane.f32.xlu0 %v601_v30 }
 0x1d4   :  { %611 = vadd.xlane.f32.xlu1 %v610_v33  ;;  %608 = vadd.xlane.f32.xlu0 %v607_v34 }
 0x1d8   :  { %617 = vadd.xlane.f32.xlu1 %v616_v37  ;;  %614 = vadd.xlane.f32.xlu0 %v613_v38 }
 0x202   :  { %v517_v39 = vpop.xlane.xlu0 %516  ;;  %v579_v56 = vpop.xlane.xlu1 %578 }
 0x203   :  { %v518_v41 = vadd.f32 1.0, %v517_v39  ;;  %v521_v44 = vadd.f32 1e-08, %v517_v39  ;;  %v580_v58 = vadd.f32 1.0, %v579_v56  ;;  %v583_v26 = vadd.f32 1e-08, %v579_v56 }
 0x205   :  { %1957 = vrcp.f32 %v518_v41 }
 0x206   :  { %v548_v45 = vpop.xlane.xlu0 %547  ;;  %1959 = vrsqrt.f32 %v521_v44 }
 0x207   :  { %v549_v46 = vadd.f32 1.0, %v548_v45  ;;  %v552_v48 = vadd.f32 1e-08, %v548_v45 }
 0x209   :  { %1961 = vrcp.f32 %v549_v46 }
 0x20a   :  { %1963 = vrsqrt.f32 %v552_v48 }
 0x20b   :  { %1965 = vrcp.f32 %v580_v58 }
 0x20c   :  { %1967 = vrsqrt.f32 %v583_v26 }
 0x212   :  { %v1958_v50 = vpop.eup %1957 }
 0x213   :  { %v520_v51 = vmul.f32 %v1958_v50, %v517_v39  ;;  %v1960_v54 = vpop.eup %1959 }
 0x215   :  { %v523_v55 = vmul.f32 %v1960_v54, %v520_v51 }
 0x216   :  { %v1962_v62 = vpop.eup %1961 }
 0x217   :  { %v524_v57 = vmul.f32 %v523_v55, %v2232_v43  ;;  %v551_v25 = vmul.f32 %v1962_v62, %v548_v45  ;;  %v1964_v43 = vpop.eup %1963 }
 0x218   :  { %v1966_v5 = vpop.eup %1965 }
 0x219   :  { %v620_v59 = vmul.f32 %v524_v57, %v2159_v18  ;;  %v619_v61 = vmul.f32 %v524_v57, %v2157_v17  ;;  %v621_v63 = vmul.f32 %v524_v57, %v2167_v27  ;;  %v622_v0 = vmul.f32 %v524_v57, %v2169_v28  ;;  %v1968_v8 = vpop.eup %1967 }
 0x21a   :  { %v554_v1 = vmul.f32 %v1964_v43, %v551_v25  ;;  %v623_v29 = vmul.f32 %v524_v57, %v2195_v49  ;;  %v624_v2 = vmul.f32 %v524_v57, %v2197_v52  ;;  %v625_v40 = vmul.f32 %v524_v57, %v2217_v12 }
 0x21b   :  { %637 = vrot.lane.b32.xlu1 %v620_v59, %s2112_s1  ;;  %635 = vrot.lane.b32.xlu0 %v619_v61, %s2112_s1  ;;  %v626_v4 = vmul.f32 %v524_v57, %v2220_v14  ;;  %v582_v6 = vmul.f32 %v1966_v5, %v579_v56 }
 0x21c   :  { %v555_v3 = vmul.f32 %v554_v1, %v2238_v47 }
 0x21d   :  { %v585_v9 = vmul.f32 %v1968_v8, %v582_v6 }
 0x21e   :  { %v684_v53 = vmul.f32 %v555_v3, %v2159_v18  ;;  %v683_v60 = vmul.f32 %v555_v3, %v2157_v17  ;;  %v685_v47 = vmul.f32 %v555_v3, %v2167_v27  ;;  %v686_v7 = vmul.f32 %v555_v3, %v2169_v28 }
 0x21f   :  { %639 = vrot.lane.b32.xlu1 %v621_v63, %s2112_s1  ;;  %641 = vrot.lane.b32.xlu0 %v622_v0, %s2112_s1  ;;  %v687_v10 = vmul.f32 %v555_v3, %v2195_v49  ;;  %v688_v11 = vmul.f32 %v555_v3, %v2197_v52  ;;  %v586_v13 = vmul.f32 %v585_v9, %v2230_v42 }
 0x220   :  { %v689_v15 = vmul.f32 %v555_v3, %v2217_v12  ;;  %v690_v16 = vmul.f32 %v555_v3, %v2220_v14 }
 0x221   :  { %v747_v19 = vmul.f32 %v586_v13, %v2157_v17  ;;  %v748_v20 = vmul.f32 %v586_v13, %v2159_v18  ;;  %v749_v21 = vmul.f32 %v586_v13, %v2167_v27  ;;  %v750_v42 = vmul.f32 %v586_v13, %v2169_v28 }
 0x222   :  { %v751_v22 = vmul.f32 %v586_v13, %v2195_v49  ;;  %v752_v23 = vmul.f32 %v586_v13, %v2197_v52  ;;  %v753_v24 = vmul.f32 %v586_v13, %v2217_v12  ;;  %v754_v30 = vmul.f32 %v586_v13, %v2220_v14 }
 0x223   :  { %643 = vrot.lane.b32.xlu1 %v623_v29, %s2112_s1  ;;  %645 = vrot.lane.b32.xlu0 %v624_v2, %s2112_s1 }
 0x227   :  { %647 = vrot.lane.b32.xlu1 %v625_v40, %s2112_s1  ;;  %649 = vrot.lane.b32.xlu0 %v626_v4, %s2112_s1 }
 0x22b   :  { %701 = vrot.lane.b32.xlu1 %v684_v53, %s2107_s19  ;;  %699 = vrot.lane.b32.xlu0 %v683_v60, %s2107_s19 }
 0x22f   :  { %703 = vrot.lane.b32.xlu1 %v685_v47, %s2107_s19  ;;  %705 = vrot.lane.b32.xlu0 %v686_v7, %s2107_s19 }
 0x233   :  { %707 = vrot.lane.b32.xlu1 %v687_v10, %s2107_s19  ;;  %709 = vrot.lane.b32.xlu0 %v688_v11, %s2107_s19 }
 0x237   :  { %711 = vrot.lane.b32.xlu1 %v689_v15, %s2107_s19  ;;  %713 = vrot.lane.b32.xlu0 %v690_v16, %s2107_s19 }
 0x23b   :  { %763 = vrot.lane.b32.xlu0 %v747_v19, %s2111_s0 }
 0x23f   :  { %765 = vrot.lane.b32.xlu0 %v748_v20, %s2111_s0 }
 0x243   :  { %767 = vrot.lane.b32.xlu0 %v749_v21, %s2111_s0 }
 0x247   :  { %769 = vrot.lane.b32.xlu0 %v750_v42, %s2111_s0 }
 0x24b   :  { %771 = vrot.lane.b32.xlu0 %v751_v22, %s2111_s0 }
 0x24f   :  { %773 = vrot.lane.b32.xlu0 %v752_v23, %s2111_s0 }
 0x253   :  { %775 = vrot.lane.b32.xlu0 %v753_v24, %s2111_s0 }
 0x255   :  { %v2329_v31 = vpop.xlane.xlu0 %596  ;;  %v2331_v32 = vpop.xlane.xlu1 %599 }
 0x257   :  { %777 = vrot.lane.b32.xlu0 %v754_v30, %s2111_s0 }
 0x259   :  { %v2333_v33 = vpop.xlane.xlu0 %602  ;;  %v2335_v34 = vpop.xlane.xlu1 %605 }
 0x25d   :  { %v2337_v35 = vpop.xlane.xlu0 %608  ;;  %v2339_v36 = vpop.xlane.xlu1 %611 }
 0x261   :  { %v2341_v37 = vpop.xlane.xlu0 %614  ;;  %v2343_v38 = vpop.xlane.xlu1 %617 }
 0x28d   :  { %v636_v39 = vpop.permute.xlu0 %635  ;;  %v638_v41 = vpop.permute.xlu1 %637 }
 0x28e   :  { %v659_v44 = vsel %vm467_vm5, %v636_v39, 0.0  ;;  %v662_v45 = vsel %vm467_vm5, %v638_v41, 0.0  ;;  %v2113_v39 = vmov 1   ;;  %v2114_v41 = vmov 0  }
 0x28f   :  { %660 = vadd.xlane.f32.xlu1 %v659_v44  ;;  %663 = vadd.xlane.f32.xlu0 %v662_v45 }
 0x290   :  { %1916 = vset.pattern.permute.xlu0 %v2113_v39  ;;  %1915 = vset.pattern.permute.xlu1 %v2114_v41 }
 0x291   :  { %v642_v46 = vpop.permute.xlu0 %641  ;;  %v640_v48 = vpop.permute.xlu1 %639 }
 0x292   :  { %v668_v50 = vsel %vm467_vm5, %v642_v46, 0.0  ;;  %v665_v51 = vsel %vm467_vm5, %v640_v48, 0.0 }
 0x293   :  { %669 = vadd.xlane.f32.xlu1 %v668_v50  ;;  %666 = vadd.xlane.f32.xlu0 %v665_v51 }
 0x295   :  { %v646_v54 = vpop.permute.xlu0 %645  ;;  %v644_v55 = vpop.permute.xlu1 %643 }
 0x296   :  { %v674_v56 = vsel %vm467_vm5, %v646_v54, 0.0  ;;  %v671_v57 = vsel %vm467_vm5, %v644_v55, 0.0 }
 0x297   :  { %675 = vadd.xlane.f32.xlu1 %v674_v56  ;;  %672 = vadd.xlane.f32.xlu0 %v671_v57 }
 0x299   :  { %v650_v58 = vpop.permute.xlu0 %649  ;;  %v648_v59 = vpop.permute.xlu1 %647 }
 0x29a   :  { %v680_v61 = vsel %vm467_vm5, %v650_v58, 0.0  ;;  %v677_v62 = vsel %vm467_vm5, %v648_v59, 0.0 }
 0x29b   :  { %681 = vadd.xlane.f32.xlu1 %v680_v61  ;;  %678 = vadd.xlane.f32.xlu0 %v677_v62 }
 0x29d   :  { %v700_v25 = vpop.permute.xlu0 %699  ;;  %v702_v63 = vpop.permute.xlu1 %701 }
 0x29e   :  { %v723_v0 = vsel %vm467_vm5, %v700_v25, 0.0  ;;  %v726_v26 = vsel %vm467_vm5, %v702_v63, 0.0 }
 0x29f   :  { %724 = vadd.xlane.f32.xlu1 %v723_v0  ;;  %727 = vadd.xlane.f32.xlu0 %v726_v26 }
 0x2a1   :  { %v706_v43 = vpop.permute.xlu0 %705  ;;  %v704_v1 = vpop.permute.xlu1 %703 }
 0x2a2   :  { %v729_v29 = vsel %vm467_vm5, %v704_v1, 0.0  ;;  %v732_v3 = vsel %vm467_vm5, %v706_v43, 0.0 }
 0x2a3   :  { %730 = vadd.xlane.f32.xlu1 %v729_v29 }
 0x2a5   :  { %v710_v2 = vpop.permute.xlu0 %709  ;;  %v708_v40 = vpop.permute.xlu1 %707 }
 0x2a6   :  { %v735_v53 = vsel %vm467_vm5, %v708_v40, 0.0  ;;  %v738_v5 = vsel %vm467_vm5, %v710_v2, 0.0 }
 0x2a7   :  { %733 = vadd.xlane.f32.xlu1 %v732_v3 }
 0x2a9   :  { %v714_v4 = vpop.permute.xlu0 %713  ;;  %v712_v6 = vpop.permute.xlu1 %711 }
 0x2aa   :  { %v741_v7 = vsel %vm467_vm5, %v712_v6, 0.0  ;;  %v744_v10 = vsel %vm467_vm5, %v714_v4, 0.0 }
 0x2ab   :  { %736 = vadd.xlane.f32.xlu1 %v735_v53 }
 0x2ad   :  { %v764_v60 = vpop.permute.xlu0 %763 }
 0x2ae   :  { %v787_v13 = vsel %vm467_vm5, %v764_v60, 0.0 }
 0x2af   :  { %739 = vadd.xlane.f32.xlu1 %v738_v5 }
 0x2b1   :  { %v766_v47 = vpop.permute.xlu0 %765 }
 0x2b2   :  { %v790_v19 = vsel %vm467_vm5, %v766_v47, 0.0 }
 0x2b3   :  { %742 = vadd.xlane.f32.xlu1 %v741_v7 }
 0x2b5   :  { %v768_v8 = vpop.permute.xlu0 %767 }
 0x2b6   :  { %v793_v9 = vsel %vm467_vm5, %v768_v8, 0.0 }
 0x2b7   :  { %794 = vadd.xlane.f32.xlu0 %v793_v9  ;;  %745 = vadd.xlane.f32.xlu1 %v744_v10 }
 0x2b9   :  { %v770_v11 = vpop.permute.xlu0 %769 }
 0x2ba   :  { %v796_v21 = vsel %vm467_vm5, %v770_v11, 0.0 }
 0x2bb   :  { %788 = vadd.xlane.f32.xlu1 %v787_v13 }
 0x2bd   :  { %v772_v15 = vpop.permute.xlu0 %771 }
 0x2be   :  { %v799_v16 = vsel %vm467_vm5, %v772_v15, 0.0 }
 0x2bf   :  { %800 = vadd.xlane.f32.xlu0 %v799_v16  ;;  %791 = vadd.xlane.f32.xlu1 %v790_v19 }
 0x2c1   :  { %v774_v20 = vpop.permute.xlu0 %773 }
 0x2c2   :  { %v802_v23 = vsel %vm467_vm5, %v774_v20, 0.0 }
 0x2c3   :  { %797 = vadd.xlane.f32.xlu1 %v796_v21 }
 0x2c5   :  { %v776_v42 = vpop.permute.xlu0 %775 }
 0x2c6   :  { %v805_v22 = vsel %vm467_vm5, %v776_v42, 0.0 }
 0x2c7   :  { %806 = vadd.xlane.f32.xlu0 %v805_v22  ;;  %803 = vadd.xlane.f32.xlu1 %v802_v23 }
 0x2c9   :  { %v778_v24 = vpop.permute.xlu0 %777 }
 0x2ca   :  { %v808_v30 = vsel %vm467_vm5, %v778_v24, 0.0 }
 0x2cb   :  { %809 = vadd.xlane.f32.xlu1 %v808_v30 }
 0x318   :  { %v661_v44 = vpop.xlane.xlu1 %660  ;;  %v664_v51 = vpop.xlane.xlu0 %663 }
 0x319   :  { %v813_v2 = vsel %vm811_vm6, %v2331_v32, %v664_v51  ;;  %v812_v3 = vsel %vm811_vm6, %v2329_v31, %v661_v44 }
 0x31c   :  { %v670_v45 = vpop.xlane.xlu1 %669  ;;  %v667_v56 = vpop.xlane.xlu0 %666 }
 0x31d   :  { %v814_v40 = vsel %vm811_vm6, %v2333_v33, %v667_v56  ;;  %v815_v4 = vsel %vm811_vm6, %v2335_v34, %v670_v45 }
 0x320   :  { %v676_v46 = vpop.xlane.xlu1 %675  ;;  %v673_v58 = vpop.xlane.xlu0 %672 }
 0x321   :  { %v816_v53 = vsel %vm811_vm6, %v2337_v35, %v673_v58  ;;  %v817_v60 = vsel %vm811_vm6, %v2339_v36, %v676_v46 }
 0x324   :  { %v682_v48 = vpop.xlane.xlu1 %681  ;;  %v679_v62 = vpop.xlane.xlu0 %678 }
 0x325   :  { %v818_v5 = vsel %vm811_vm6, %v2341_v37, %v679_v62  ;;  %v819_v13 = vsel %vm811_vm6, %v2343_v38, %v682_v48 }
 0x328   :  { %v725_v50 = vpop.xlane.xlu1 %724  ;;  %v728_v63 = vpop.xlane.xlu0 %727 }
 0x329   :  { %v822_v32 = vsel %vm820_vm7, %v813_v2, %v728_v63  ;;  %v821_v8 = vsel %vm820_vm7, %v812_v3, %v725_v50 }
 0x32c   :  { %v731_v54 = vpop.xlane.xlu1 %730 }
 0x32d   :  { %v823_v9 = vsel %vm820_vm7, %v814_v40, %v731_v54 }
 0x330   :  { %v734_v55 = vpop.xlane.xlu1 %733 }
 0x331   :  { %v824_v10 = vsel %vm820_vm7, %v815_v4, %v734_v55 }
 0x334   :  { %v737_v57 = vpop.xlane.xlu1 %736 }
 0x335   :  { %v825_v31 = vsel %vm820_vm7, %v816_v53, %v737_v57 }
 0x338   :  { %v740_v59 = vpop.xlane.xlu1 %739 }
 0x339   :  { %v826_v6 = vsel %vm820_vm7, %v817_v60, %v740_v59 }
 0x33c   :  { %v743_v61 = vpop.xlane.xlu1 %742 }
 0x33d   :  { %v827_v33 = vsel %vm820_vm7, %v818_v5, %v743_v61 }
 0x340   :  { %v746_v25 = vpop.xlane.xlu1 %745  ;;  %v795_v26 = vpop.xlane.xlu0 %794 }
 0x341   :  { %v2409_v15 = vsel %vm829_vm8, %v823_v9, %v795_v26  ;;  %v828_v20 = vsel %vm820_vm7, %v819_v13, %v746_v25 }
 0x342   :  { %v849_v30 = vsel %vm846_vm9, %v2409_v15, -inf }
 0x344   :  { %v789_v0 = vpop.xlane.xlu1 %788 }
 0x345   :  { %v2412_v16 = vsel %vm829_vm8, %v821_v8, %v789_v0 }
 0x346   :  { %v847_v44 = vsel %vm846_vm9, %v2412_v16, -inf }
 0x348   :  { %v792_v43 = vpop.xlane.xlu1 %791  ;;  %v801_v1 = vpop.xlane.xlu0 %800 }
 0x349   :  { %v2390_v34 = vsel %vm829_vm8, %v825_v31, %v801_v1  ;;  %v2393_v35 = vsel %vm829_vm8, %v822_v32, %v792_v43 }
 0x34a   :  { %v851_v21 = vsel %vm846_vm9, %v2390_v34, -inf  ;;  %v848_v42 = vsel %vm846_vm9, %v2393_v35, -inf }
 0x34b   :  { %v852_v48 = vmax.f32 %v847_v44, %v851_v21 }
 0x34c   :  { %v798_v29 = vpop.xlane.xlu1 %797 }
 0x34d   :  { %v2415_v19 = vsel %vm829_vm8, %v824_v10, %v798_v29 }
 0x34e   :  { %v850_v45 = vsel %vm846_vm9, %v2415_v19, -inf }
 0x350   :  { %v807_v47 = vpop.xlane.xlu0 %806  ;;  %v804_v7 = vpop.xlane.xlu1 %803 }
 0x351   :  { %v2396_v36 = vsel %vm829_vm8, %v827_v33, %v807_v47  ;;  %v2399_v37 = vsel %vm829_vm8, %v826_v6, %v804_v7 }
 0x352   :  { %v853_v11 = vsel %vm846_vm9, %v2399_v37, -inf  ;;  %v855_v38 = vsel %vm846_vm9, %v2396_v36, -inf }
 0x353   :  { %v854_v23 = vmax.f32 %v848_v42, %v853_v11  ;;  %v856_v50 = vmax.f32 %v849_v30, %v855_v38 }
 0x354   :  { %v810_v22 = vpop.xlane.xlu1 %809 }
 0x355   :  { %v2425_v24 = vsel %vm829_vm8, %v828_v20, %v810_v22  ;;  %v859_v54 = vmax.f32 %v852_v48, %v854_v23 }
 0x356   :  { %v857_v46 = vsel %vm846_vm9, %v2425_v24, -inf }
 0x357   :  { %v858_v51 = vmax.f32 %v850_v45, %v857_v46 }
 0x359   :  { %v860_v55 = vmax.f32 %v856_v50, %v858_v51 }
 0x35b   :  { %v861_v56 = vmax.f32 %v859_v54, %v860_v55 }
 0x35d   :  { %v862_v57 = vsub.f32 %v2412_v16, %v861_v56  ;;  %v863_v58 = vsub.f32 %v2393_v35, %v861_v56  ;;  %v864_v59 = vsub.f32 %v2409_v15, %v861_v56  ;;  %v865_v61 = vsub.f32 %v2415_v19, %v861_v56 }
 0x35e   :  { %v866_v62 = vsub.f32 %v2390_v34, %v861_v56  ;;  %v867_v26 = vsub.f32 %v2399_v37, %v861_v56  ;;  %v868_v1 = vsub.f32 %v2396_v36, %v861_v56  ;;  %v869_v2 = vsub.f32 %v2425_v24, %v861_v56 }
 0x35f   :  { %v870_v25 = vmul.f32 1.442695, %v862_v57  ;;  %v872_v63 = vmul.f32 1.442695, %v863_v58  ;;  %v874_v0 = vmul.f32 1.442695, %v864_v59 }
 0x360   :  { %v876_v43 = vmul.f32 1.442695, %v865_v61  ;;  %v878_v29 = vmul.f32 1.442695, %v866_v62  ;;  %v880_v3 = vmul.f32 1.442695, %v867_v26 }
 0x361   :  { %1969 = vpow2.f32 %v870_v25  ;;  %v882_v40 = vmul.f32 1.442695, %v868_v1  ;;  %v884_v4 = vmul.f32 1.442695, %v869_v2  ;;  %v2115_v59 = vmov 2  }
 0x362   :  { %1971 = vpow2.f32 %v872_v63  ;;  %v2116_v61 = vmov 3  }
 0x363   :  { %1973 = vpow2.f32 %v874_v0 }
 0x364   :  { %1975 = vpow2.f32 %v876_v43 }
 0x365   :  { %1977 = vpow2.f32 %v878_v29 }
 0x366   :  { %1979 = vpow2.f32 %v880_v3 }
 0x367   :  { %1981 = vpow2.f32 %v882_v40 }
 0x368   :  { %1983 = vpow2.f32 %v884_v4 }
 0x36e   :  { %v1970_v53 = vpop.eup %1969 }
 0x36f   :  { %v1972_v60 = vpop.eup %1971  ;;  %v886_v5 = vsel %vm846_vm9, %v1970_v53, 0.0 }
 0x370   :  { %v1974_v32 = vpop.eup %1973  ;;  %v887_v31 = vsel %vm846_vm9, %v1972_v60, 0.0 }
 0x371   :  { %v1976_v6 = vpop.eup %1975  ;;  %v888_v33 = vadd.f32 %v887_v31, %v886_v5  ;;  %v889_v47 = vsel %vm846_vm9, %v1974_v32, 0.0 }
 0x372   :  { %v1978_v7 = vpop.eup %1977  ;;  %v891_v9 = vsel %vm846_vm9, %v1976_v6, 0.0 }
 0x373   :  { %v890_v8 = vadd.f32 %v889_v47, %v888_v33  ;;  %v1980_v10 = vpop.eup %1979  ;;  %v893_v13 = vsel %vm846_vm9, %v1978_v7, 0.0 }
 0x374   :  { %v1982_v20 = vpop.eup %1981  ;;  %v895_v42 = vsel %vm846_vm9, %v1980_v10, 0.0 }
 0x375   :  { %v892_v11 = vadd.f32 %v891_v9, %v890_v8  ;;  %v1984_v38 = vpop.eup %1983  ;;  %v897_v23 = vsel %vm846_vm9, %v1982_v20, 0.0 }
 0x376   :  { %v899_v44 = vsel %vm846_vm9, %v1984_v38, 0.0 }
 0x377   :  { %v894_v21 = vadd.f32 %v893_v13, %v892_v11 }
 0x379   :  { %v896_v22 = vadd.f32 %v895_v42, %v894_v21 }
 0x37b   :  { %v898_v30 = vadd.f32 %v897_v23, %v896_v22 }
 0x37d   :  { %v900_v45 = vadd.f32 %v899_v44, %v898_v30 }
 0x37f   :  { %1985 = vrcp.f32 %v900_v45 }
 0x38c   :  { %v1986_v46 = vpop.eup %1985 }
 0x38d   :  { %v903_v48 = vmul.f32 %v1986_v46, %v1972_v60  ;;  %v902_v50 = vmul.f32 %v1986_v46, %v1970_v53  ;;  %v904_v51 = vmul.f32 %v1986_v46, %v1974_v32  ;;  %v905_v54 = vmul.f32 %v1986_v46, %v1976_v6 }
 0x38e   :  { %v906_v55 = vmul.f32 %v1986_v46, %v1978_v7  ;;  %v907_v56 = vmul.f32 %v1986_v46, %v1980_v10  ;;  %v908_v57 = vmul.f32 %v1986_v46, %v1982_v20  ;;  %v909_v58 = vmul.f32 %v1986_v46, %v1984_v38 }
 0x38f   :  { %917 = vperm.xlu1 %1915, %v903_v48   ;;  %985 = vperm.xlu0 %1916, %v902_v50  }
 0x393   :  { %922 = vperm.xlu1 %1915, %v904_v51   ;;  %989 = vperm.xlu0 %1916, %v903_v48  }
 0x397   :  { %927 = vperm.xlu1 %1915, %v905_v54   ;;  %993 = vperm.xlu0 %1916, %v904_v51  }
 0x39b   :  { %932 = vperm.xlu1 %1915, %v906_v55   ;;  %997 = vperm.xlu0 %1916, %v905_v54  }
 0x39f   :  { %937 = vperm.xlu1 %1915, %v907_v56   ;;  %1001 = vperm.xlu0 %1916, %v906_v55  }
 0x3a3   :  { %942 = vperm.xlu1 %1915, %v908_v57   ;;  %1005 = vperm.xlu0 %1916, %v907_v56  }
 0x3a7   :  { %947 = vperm.xlu1 %1915, %v909_v58   ;;  %1009 = vperm.xlu0 %1916, %v908_v57  }
 0x3ab   :  { %1917 = vset.pattern.permute.xlu1 %v2115_v59  ;;  %1013 = vperm.xlu0 %1916, %v909_v58  }
 0x3ac   :  { %1055 = vperm.xlu1 %1917, %v902_v50  }
 0x3af   :  { %1918 = vset.pattern.permute.xlu0 %v2115_v59 }
 0x3b0   :  { %1920 = vset.pattern.permute.xlu1 %v2116_v61  ;;  %1059 = vperm.xlu0 %1918, %v903_v48  }
 0x3b1   :  { %1129 = vperm.xlu1 %1920, %v903_v48  }
 0x3b4   :  { %1919 = vset.pattern.permute.xlu0 %v2116_v61 }
 0x3b5   :  { %1133 = vperm.xlu1 %1920, %v904_v51   ;;  %1125 = vperm.xlu0 %1919, %v902_v50  }
 0x3b9   :  { %1922 = vset.pattern.permute.xlu1 %v2115_v59  ;;  %1921 = vset.pattern.permute.xlu0 %v2115_v59 }
 0x3ba   :  { %1067 = vperm.xlu1 %1922, %v905_v54   ;;  %1063 = vperm.xlu0 %1921, %v904_v51  }
 0x3be   :  { %1071 = vperm.xlu1 %1922, %v906_v55   ;;  %1923 = vset.pattern.permute.xlu0 %v2116_v61 }
 0x3bf   :  { %1137 = vperm.xlu0 %1923, %v905_v54  }
 0x3c2   :  { %1924 = vset.pattern.permute.xlu1 %v2116_v61 }
 0x3c3   :  { %1141 = vperm.xlu1 %1924, %v906_v55   ;;  %1925 = vset.pattern.permute.xlu0 %v2115_v59 }
 0x3c4   :  { %1075 = vperm.xlu0 %1925, %v907_v56  }
 0x3c7   :  { %1145 = vperm.xlu1 %1924, %v907_v56  }
 0x3c8   :  { %1927 = vset.pattern.permute.xlu0 %v2116_v61 }
 0x3c9   :  { %1149 = vperm.xlu0 %1927, %v908_v57  }
 0x3cb   :  { %1926 = vset.pattern.permute.xlu1 %v2115_v59 }
 0x3cc   :  { %1079 = vperm.xlu1 %1926, %v908_v57  }
 0x3cd   :  { %1928 = vset.pattern.permute.xlu0 %v2114_v41 }
 0x3ce   :  { %912 = vperm.xlu0 %1928, %v902_v50  }
 0x3d0   :  { %1083 = vperm.xlu1 %1926, %v909_v58  }
 0x3d4   :  { %1929 = vset.pattern.permute.xlu1 %v2116_v61 }
 0x3d5   :  { %1153 = vperm.xlu1 %1929, %v909_v58  }
 0x3d9   :  { %1930 = vset.pattern.permute.xlu1 %v2114_v41 }
 0x40a   :  { %v2465_v62 = vpop.permute.xlu1 %917  ;;  %v986_v25 = vpop.permute.xlu0 %985 }
 0x40b   :  { %v1016_v3 = vmul.f32 %v986_v25, %v2157_v17 }
 0x40d   :  { %v1024_v5 = vsel %vm494_vm3, %v1016_v3, 0.0 }
 0x40e   :  { %v2467_v63 = vpop.permute.xlu1 %922  ;;  %v990_v0 = vpop.permute.xlu0 %989 }
 0x40f   :  { %v1017_v2 = vmul.f32 %v990_v0, %v2159_v18 }
 0x411   :  { %v1025_v53 = vsel %vm494_vm3, %v1017_v2, 0.0 }
 0x412   :  { %v2469_v26 = vpop.permute.xlu1 %927  ;;  %v994_v43 = vpop.permute.xlu0 %993  ;;  %v1026_v6 = vadd.f32 %v1025_v53, %v1024_v5 }
 0x413   :  { %v1018_v40 = vmul.f32 %v994_v43, %v2167_v27 }
 0x415   :  { %v1027_v32 = vsel %vm494_vm3, %v1018_v40, 0.0 }
 0x416   :  { %v2471_v1 = vpop.permute.xlu1 %932  ;;  %v998_v29 = vpop.permute.xlu0 %997  ;;  %v1028_v9 = vadd.f32 %v1027_v32, %v1026_v6 }
 0x417   :  { %v1019_v60 = vmul.f32 %v998_v29, %v2169_v28 }
 0x419   :  { %v1029_v7 = vsel %vm494_vm3, %v1019_v60, 0.0 }
 0x41a   :  { %v2476_v4 = vpop.permute.xlu1 %937  ;;  %v1002_v41 = vpop.permute.xlu0 %1001  ;;  %v1030_v11 = vadd.f32 %v1029_v7, %v1028_v9 }
 0x41b   :  { %v1020_v31 = vmul.f32 %v1002_v41, %v2195_v49 }
 0x41d   :  { %v1031_v10 = vsel %vm494_vm3, %v1020_v31, 0.0 }
 0x41e   :  { %v2483_v33 = vpop.permute.xlu1 %942  ;;  %v1006_v47 = vpop.permute.xlu0 %1005  ;;  %v1032_v38 = vadd.f32 %v1031_v10, %v1030_v11 }
 0x41f   :  { %v1021_v8 = vmul.f32 %v1006_v47, %v2197_v52 }
 0x421   :  { %v1033_v21 = vsel %vm494_vm3, %v1021_v8, 0.0 }
 0x422   :  { %v2488_v13 = vpop.permute.xlu1 %947  ;;  %v1010_v20 = vpop.permute.xlu0 %1009  ;;  %v1034_v23 = vadd.f32 %v1033_v21, %v1032_v38 }
 0x423   :  { %v1022_v42 = vmul.f32 %v1010_v20, %v2217_v12 }
 0x425   :  { %v1035_v22 = vsel %vm494_vm3, %v1022_v42, 0.0 }
 0x426   :  { %v1014_v30 = vpop.permute.xlu0 %1013  ;;  %v1036_v46 = vadd.f32 %v1035_v22, %v1034_v23 }
 0x427   :  { %v1023_v44 = vmul.f32 %v1014_v30, %v2220_v14  ;;  %v1056_v45 = vpop.permute.xlu1 %1055 }
 0x428   :  { %v1086_v29 = vmul.f32 %v1056_v45, %v2157_v17 }
 0x429   :  { %v1037_v48 = vsel %vm494_vm3, %v1023_v44, 0.0 }
 0x42a   :  { %v2495_v50 = vadd.f32 %v1037_v48, %v1036_v46  ;;  %v1094_v53 = vsel %vm525_vm4, %v1086_v29, 0.0  ;;  %v951_v46 = vmul.f32 %v2465_v62, %v2159_v18  ;;  %v952_v29 = vmul.f32 %v2467_v63, %v2167_v27 }
 0x42b   :  { %v1060_v51 = vpop.permute.xlu0 %1059 }
 0x42c   :  { %v1130_v54 = vpop.permute.xlu1 %1129  ;;  %v1039_v55 = vmul.f32 %v2495_v50, %v2495_v50  ;;  %v1087_v0 = vmul.f32 %v1060_v51, %v2159_v18 }
 0x42d   :  { %v1157_v31 = vmul.f32 %v1130_v54, %v2159_v18 }
 0x42e   :  { %1041 = vrot.lane.b32.xlu0 %v1039_v55, %s2112_s1  ;;  %v1095_v40 = vsel %vm525_vm4, %v1087_v0, 0.0 }
 0x42f   :  { %v1096_v32 = vadd.f32 %v1095_v40, %v1094_v53  ;;  %v1165_v11 = vsel %vm556_vm2, %v1157_v31, 0.0  ;;  %v959_v40 = vsel %vm467_vm5, %v951_v46, 0.0 }
 0x430   :  { %v1134_v56 = vpop.permute.xlu1 %1133  ;;  %v1126_v57 = vpop.permute.xlu0 %1125 }
 0x431   :  { %v1156_v41 = vmul.f32 %v1126_v57, %v2157_v17  ;;  %v1158_v20 = vmul.f32 %v1134_v56, %v2167_v27 }
 0x433   :  { %v1164_v7 = vsel %vm556_vm2, %v1156_v41, 0.0  ;;  %v1167_v48 = vsel %vm556_vm2, %v1158_v20, 0.0 }
 0x434   :  { %v1166_v42 = vadd.f32 %v1165_v11, %v1164_v7 }
 0x435   :  { %v1068_v58 = vpop.permute.xlu1 %1067  ;;  %v1064_v25 = vpop.permute.xlu0 %1063 }
 0x436   :  { %v1088_v2 = vmul.f32 %v1064_v25, %v2167_v27  ;;  %v1089_v47 = vmul.f32 %v1068_v58, %v2169_v28  ;;  %v1168_v56 = vadd.f32 %v1167_v48, %v1166_v42 }
 0x438   :  { %v1097_v60 = vsel %vm525_vm4, %v1088_v2, 0.0  ;;  %v1099_v38 = vsel %vm525_vm4, %v1089_v47, 0.0 }
 0x439   :  { %v1072_v43 = vpop.permute.xlu1 %1071  ;;  %v1098_v8 = vadd.f32 %v1097_v60, %v1096_v32  ;;  %v953_v32 = vmul.f32 %v2469_v26, %v2169_v28 }
 0x43a   :  { %v1138_v3 = vpop.permute.xlu0 %1137  ;;  %v1090_v9 = vmul.f32 %v1072_v43, %v2195_v49 }
 0x43b   :  { %v1159_v21 = vmul.f32 %v1138_v3, %v2169_v28  ;;  %v1100_v30 = vadd.f32 %v1099_v38, %v1098_v8  ;;  %v961_v8 = vsel %vm467_vm5, %v952_v29, 0.0  ;;  %v963_v26 = vsel %vm467_vm5, %v953_v32, 0.0 }
 0x43c   :  { %v1101_v45 = vsel %vm525_vm4, %v1090_v9, 0.0  ;;  %v954_v9 = vmul.f32 %v2471_v1, %v2195_v49  ;;  %v955_v38 = vmul.f32 %v2476_v4, %v2197_v52 }
 0x43d   :  { %v1169_v51 = vsel %vm556_vm2, %v1159_v21, 0.0  ;;  %v1102_v25 = vadd.f32 %v1101_v45, %v1100_v30  ;;  %v956_v45 = vmul.f32 %v2483_v33, %v2217_v12 }
 0x43e   :  { %v1142_v5 = vpop.permute.xlu1 %1141  ;;  %v1170_v62 = vadd.f32 %v1169_v51, %v1168_v56  ;;  %v967_v4 = vsel %vm467_vm5, %v955_v38, 0.0 }
 0x43f   :  { %v1076_v6 = vpop.permute.xlu0 %1075  ;;  %v1160_v44 = vmul.f32 %v1142_v5, %v2195_v49 }
 0x440   :  { %v1091_v22 = vmul.f32 %v1076_v6, %v2197_v52 }
 0x441   :  { %v1171_v0 = vsel %vm556_vm2, %v1160_v44, 0.0  ;;  %v965_v44 = vsel %vm467_vm5, %v954_v9, 0.0 }
 0x442   :  { %v1146_v10 = vpop.permute.xlu1 %1145  ;;  %v1103_v57 = vsel %vm525_vm4, %v1091_v22, 0.0  ;;  %v1172_v31 = vadd.f32 %v1171_v0, %v1170_v62 }
 0x443   :  { %v1161_v54 = vmul.f32 %v1146_v10, %v2197_v52  ;;  %v1104_v41 = vadd.f32 %v1103_v57, %v1102_v25  ;;  %v969_v57 = vsel %vm467_vm5, %v956_v45, 0.0 }
 0x444   :  { %v1150_v23 = vpop.permute.xlu0 %1149 }
 0x445   :  { %v1173_v53 = vsel %vm556_vm2, %v1161_v54, 0.0  ;;  %v1162_v60 = vmul.f32 %v1150_v23, %v2217_v12  ;;  %v957_v54 = vmul.f32 %v2488_v13, %v2220_v14 }
 0x446   :  { %v1174_v10 = vadd.f32 %v1173_v53, %v1172_v31 }
 0x447   :  { %v1080_v55 = vpop.permute.xlu1 %1079  ;;  %v1175_v20 = vsel %vm556_vm2, %v1162_v60, 0.0  ;;  %v971_v25 = vsel %vm467_vm5, %v957_v54, 0.0 }
 0x448   :  { %v1092_v58 = vmul.f32 %v1080_v55, %v2217_v12  ;;  %v1176_v46 = vadd.f32 %v1175_v20, %v1174_v10 }
 0x449   :  { %v913_v43 = vpop.permute.xlu0 %912 }
 0x44a   :  { %v1105_v2 = vsel %vm525_vm4, %v1092_v58, 0.0  ;;  %v950_v3 = vmul.f32 %v913_v43, %v2157_v17 }
 0x44b   :  { %v1084_v5 = vpop.permute.xlu1 %1083  ;;  %v1106_v47 = vadd.f32 %v1105_v2, %v1104_v41 }
 0x44c   :  { %v958_v6 = vsel %vm467_vm5, %v950_v3, 0.0  ;;  %v1093_v63 = vmul.f32 %v1084_v5, %v2220_v14 }
 0x44d   :  { %v960_v7 = vadd.f32 %v959_v40, %v958_v6 }
 0x44e   :  { %v1107_v11 = vsel %vm525_vm4, %v1093_v63, 0.0 }
 0x44f   :  { %v962_v21 = vadd.f32 %v961_v8, %v960_v7  ;;  %v2542_v42 = vadd.f32 %v1107_v11, %v1106_v47 }
 0x450   :  { %v1154_v22 = vpop.permute.xlu1 %1153 }
 0x451   :  { %v964_v23 = vadd.f32 %v963_v26, %v962_v21  ;;  %v1163_v30 = vmul.f32 %v1154_v22, %v2220_v14  ;;  %v1109_v1 = vmul.f32 %v2542_v42, %v2542_v42 }
 0x453   :  { %v966_v48 = vadd.f32 %v965_v44, %v964_v23  ;;  %v1177_v51 = vsel %vm556_vm2, %v1163_v30, 0.0  ;;  %1111 = vrot.lane.b32.xlu0 %v1109_v1, %s2107_s19 }
 0x454   :  { %v2558_v55 = vadd.f32 %v1177_v51, %v1176_v46 }
 0x455   :  { %v968_v56 = vadd.f32 %v967_v4, %v966_v48 }
 0x456   :  { %v1179_v58 = vmul.f32 %v2558_v55, %v2558_v55 }
 0x457   :  { %v970_v33 = vadd.f32 %v969_v57, %v968_v56 }
 0x458   :  { %1181 = vrot.lane.b32.xlu0 %v1179_v58, %s2111_s0 }
 0x459   :  { %v972_v0 = vadd.f32 %v971_v25, %v970_v33 }
 0x45b   :  { %v973_v43 = vmul.f32 %v972_v0, %v972_v0 }
 0x45d   :  { %v974_v29 = vsel %vm467_vm5, %v973_v43, 0.0 }
 0x45e   :  { %975 = vadd.xlane.f32.xlu1 %v974_v29 }
 0x4a0   :  { %v1042_v62 = vpop.permute.xlu0 %1041 }
 0x4a1   :  { %v1044_v13 = vsel %vm467_vm5, %v1042_v62, 0.0 }
 0x4a2   :  { %1045 = vadd.xlane.f32.xlu1 %v1044_v13 }
 0x4c5   :  { %v1112_v2 = vpop.permute.xlu0 %1111 }
 0x4c6   :  { %v1114_v3 = vsel %vm467_vm5, %v1112_v2, 0.0 }
 0x4c7   :  { %1115 = vadd.xlane.f32.xlu0 %v1114_v3 }
 0x4ca   :  { %v1182_v40 = vpop.permute.xlu0 %1181 }
 0x4cb   :  { %v1184_v41 = vsel %vm467_vm5, %v1182_v40, 0.0 }
 0x4cc   :  { %1185 = vadd.xlane.f32.xlu1 %v1184_v41 }
 0x4e7   :  { %v976_v53 = vpop.xlane.xlu1 %975 }
 0x4e8   :  { %v977_v60 = vadd.f32 1.0, %v976_v53  ;;  %v980_v5 = vadd.f32 1e-08, %v976_v53 }
 0x4ea   :  { %1987 = vrcp.f32 %v977_v60 }
 0x4eb   :  { %1989 = vrsqrt.f32 %v980_v5 }
 0x4f7   :  { %v1988_v32 = vpop.eup %1987 }
 0x4f8   :  { %v979_v31 = vmul.f32 %v1988_v32, %v976_v53  ;;  %v1990_v6 = vpop.eup %1989 }
 0x4fa   :  { %v982_v63 = vmul.f32 %v1990_v6, %v979_v31 }
 0x4fc   :  { %v983_v47 = vmul.f32 %v982_v63, %v972_v0 }
 0x4fe   :  { %v1194_v7 = vmul.f32 %v983_v47, %v2157_v17  ;;  %v1195_v8 = vmul.f32 %v983_v47, %v2159_v18  ;;  %v1196_v11 = vmul.f32 %v983_v47, %v2167_v27  ;;  %v1197_v20 = vmul.f32 %v983_v47, %v2169_v28 }
 0x4ff   :  { %v1198_v38 = vmul.f32 %v983_v47, %v2195_v49  ;;  %v1199_v22 = vmul.f32 %v983_v47, %v2197_v52  ;;  %v1200_v1 = vmul.f32 %v983_v47, %v2217_v12  ;;  %v1201_v44 = vmul.f32 %v983_v47, %v2220_v14 }
 0x500   :  { %v1202_v9 = vsel %vm467_vm5, %v1194_v7, 0.0  ;;  %v1205_v10 = vsel %vm467_vm5, %v1195_v8, 0.0  ;;  %v1208_v21 = vsel %vm467_vm5, %v1196_v11, 0.0  ;;  %v1211_v26 = vsel %vm467_vm5, %v1197_v20, 0.0 }
 0x501   :  { %1203 = vadd.xlane.f32.xlu0 %v1202_v9  ;;  %1206 = vadd.xlane.f32.xlu1 %v1205_v10  ;;  %v1214_v23 = vsel %vm467_vm5, %v1198_v38, 0.0  ;;  %v1217_v30 = vsel %vm467_vm5, %v1199_v22, 0.0  ;;  %v1220_v45 = vsel %vm467_vm5, %v1200_v1, 0.0  ;;  %v1223_v46 = vsel %vm467_vm5, %v1201_v44, 0.0 }
 0x505   :  { %1209 = vadd.xlane.f32.xlu0 %v1208_v21  ;;  %1212 = vadd.xlane.f32.xlu1 %v1211_v26 }
 0x509   :  { %1215 = vadd.xlane.f32.xlu0 %v1214_v23  ;;  %1218 = vadd.xlane.f32.xlu1 %v1217_v30 }
 0x50d   :  { %1221 = vadd.xlane.f32.xlu0 %v1220_v45  ;;  %1224 = vadd.xlane.f32.xlu1 %v1223_v46 }
 0x52b   :  { %v1046_v48 = vpop.xlane.xlu1 %1045 }
 0x52c   :  { %v1047_v51 = vadd.f32 1.0, %v1046_v48  ;;  %v1050_v4 = vadd.f32 1e-08, %v1046_v48 }
 0x52e   :  { %1991 = vrcp.f32 %v1047_v51 }
 0x52f   :  { %1993 = vrsqrt.f32 %v1050_v4 }
 0x53b   :  { %v1992_v54 = vpop.eup %1991 }
 0x53c   :  { %v1049_v56 = vmul.f32 %v1992_v54, %v1046_v48  ;;  %v1994_v57 = vpop.eup %1993 }
 0x53e   :  { %v1052_v58 = vmul.f32 %v1994_v57, %v1049_v56 }
 0x540   :  { %v1053_v33 = vmul.f32 %v1052_v58, %v2495_v50 }
 0x542   :  { %v1226_v25 = vmul.f32 %v1053_v33, %v2157_v17  ;;  %v1227_v0 = vmul.f32 %v1053_v33, %v2159_v18  ;;  %v1230_v43 = vmul.f32 %v1053_v33, %v2195_v49  ;;  %v1228_v29 = vmul.f32 %v1053_v33, %v2167_v27 }
 0x543   :  { %v1232_v62 = vmul.f32 %v1053_v33, %v2217_v12  ;;  %v1229_v50 = vmul.f32 %v1053_v33, %v2169_v28  ;;  %v1231_v13 = vmul.f32 %v1053_v33, %v2197_v52  ;;  %v1233_v41 = vmul.f32 %v1053_v33, %v2220_v14 }
 0x544   :  { %1242 = vrot.lane.b32.xlu0 %v1226_v25, %s2112_s1  ;;  %1244 = vrot.lane.b32.xlu1 %v1227_v0, %s2112_s1 }
 0x548   :  { %1250 = vrot.lane.b32.xlu0 %v1230_v43, %s2112_s1  ;;  %1246 = vrot.lane.b32.xlu1 %v1228_v29, %s2112_s1 }
 0x54c   :  { %1254 = vrot.lane.b32.xlu0 %v1232_v62, %s2112_s1  ;;  %1248 = vrot.lane.b32.xlu1 %v1229_v50, %s2112_s1 }
 0x550   :  { %1252 = vrot.lane.b32.xlu1 %v1231_v13, %s2112_s1  ;;  %v1116_v2 = vpop.xlane.xlu0 %1115 }
 0x551   :  { %v1117_v3 = vadd.f32 1.0, %v1116_v2  ;;  %v1120_v40 = vadd.f32 1e-08, %v1116_v2 }
 0x553   :  { %1995 = vrcp.f32 %v1117_v3 }
 0x554   :  { %1256 = vrot.lane.b32.xlu1 %v1233_v41, %s2112_s1  ;;  %1997 = vrsqrt.f32 %v1120_v40 }
 0x555   :  { %v1186_v53 = vpop.xlane.xlu1 %1185 }
 0x556   :  { %v1187_v60 = vadd.f32 1.0, %v1186_v53  ;;  %v1190_v5 = vadd.f32 1e-08, %v1186_v53 }
 0x558   :  { %1999 = vrcp.f32 %v1187_v60 }
 0x559   :  { %2001 = vrsqrt.f32 %v1190_v5 }
 0x560   :  { %v1996_v32 = vpop.eup %1995 }
 0x561   :  { %v1119_v31 = vmul.f32 %v1996_v32, %v1116_v2  ;;  %v1998_v6 = vpop.eup %1997 }
 0x563   :  { %v1122_v63 = vmul.f32 %v1998_v6, %v1119_v31 }
 0x565   :  { %v2000_v47 = vpop.eup %1999  ;;  %v1123_v7 = vmul.f32 %v1122_v63, %v2542_v42 }
 0x566   :  { %v1189_v8 = vmul.f32 %v2000_v47, %v1186_v53  ;;  %v2002_v11 = vpop.eup %2001 }
 0x567   :  { %v1291_v9 = vmul.f32 %v1123_v7, %v2159_v18  ;;  %v1290_v10 = vmul.f32 %v1123_v7, %v2157_v17  ;;  %v1292_v21 = vmul.f32 %v1123_v7, %v2167_v27  ;;  %v1294_v26 = vmul.f32 %v1123_v7, %v2195_v49 }
 0x568   :  { %v1192_v20 = vmul.f32 %v2002_v11, %v1189_v8  ;;  %v1293_v38 = vmul.f32 %v1123_v7, %v2169_v28  ;;  %v1296_v22 = vmul.f32 %v1123_v7, %v2217_v12  ;;  %v1295_v23 = vmul.f32 %v1123_v7, %v2197_v52 }
 0x569   :  { %1308 = vrot.lane.b32.xlu1 %v1291_v9, %s2107_s19  ;;  %1306 = vrot.lane.b32.xlu0 %v1290_v10, %s2107_s19  ;;  %v1297_v1 = vmul.f32 %v1123_v7, %v2220_v14 }
 0x56a   :  { %v1193_v42 = vmul.f32 %v1192_v20, %v2558_v55 }
 0x56c   :  { %v1354_v30 = vmul.f32 %v1193_v42, %v2157_v17  ;;  %v1358_v55 = vmul.f32 %v1193_v42, %v2195_v49  ;;  %v1355_v44 = vmul.f32 %v1193_v42, %v2159_v18  ;;  %v1360_v45 = vmul.f32 %v1193_v42, %v2217_v12 }
 0x56d   :  { %1310 = vrot.lane.b32.xlu1 %v1292_v21, %s2107_s19  ;;  %1314 = vrot.lane.b32.xlu0 %v1294_v26, %s2107_s19  ;;  %v1356_v46 = vmul.f32 %v1193_v42, %v2167_v27  ;;  %v1357_v48 = vmul.f32 %v1193_v42, %v2169_v28  ;;  %v1359_v51 = vmul.f32 %v1193_v42, %v2197_v52 }
 0x56e   :  { %v1361_v4 = vmul.f32 %v1193_v42, %v2220_v14 }
 0x571   :  { %1312 = vrot.lane.b32.xlu1 %v1293_v38, %s2107_s19  ;;  %1318 = vrot.lane.b32.xlu0 %v1296_v22, %s2107_s19 }
 0x575   :  { %1316 = vrot.lane.b32.xlu1 %v1295_v23, %s2107_s19  ;;  %1370 = vrot.lane.b32.xlu0 %v1354_v30, %s2111_s0 }
 0x579   :  { %1320 = vrot.lane.b32.xlu1 %v1297_v1, %s2107_s19  ;;  %1378 = vrot.lane.b32.xlu0 %v1358_v55, %s2111_s0 }
 0x57d   :  { %1372 = vrot.lane.b32.xlu1 %v1355_v44, %s2111_s0  ;;  %1382 = vrot.lane.b32.xlu0 %v1360_v45, %s2111_s0 }
 0x581   :  { %1374 = vrot.lane.b32.xlu1 %v1356_v46, %s2111_s0 }
 0x585   :  { %1376 = vrot.lane.b32.xlu1 %v1357_v48, %s2111_s0 }
 0x589   :  { %1380 = vrot.lane.b32.xlu1 %v1359_v51, %s2111_s0 }
 0x58a   :  { %v2636_v54 = vpop.xlane.xlu1 %1206  ;;  %v2638_v56 = vpop.xlane.xlu0 %1203 }
 0x58d   :  { %1384 = vrot.lane.b32.xlu1 %v1361_v4, %s2111_s0 }
 0x58e   :  { %v2640_v57 = vpop.xlane.xlu1 %1212  ;;  %v2642_v58 = vpop.xlane.xlu0 %1209 }
 0x592   :  { %v2644_v33 = vpop.xlane.xlu1 %1218  ;;  %v2646_v25 = vpop.xlane.xlu0 %1215 }
 0x596   :  { %v2648_v0 = vpop.xlane.xlu1 %1224  ;;  %v2650_v43 = vpop.xlane.xlu0 %1221 }
 0x5b6   :  { %v1245_v29 = vpop.permute.xlu1 %1244  ;;  %v1243_v62 = vpop.permute.xlu0 %1242 }
 0x5b7   :  { %v1266_v50 = vsel %vm467_vm5, %v1243_v62, 0.0  ;;  %v1269_v13 = vsel %vm467_vm5, %v1245_v29, 0.0 }
 0x5b8   :  { %1270 = vadd.xlane.f32.xlu1 %v1269_v13  ;;  %1267 = vadd.xlane.f32.xlu0 %v1266_v50 }
 0x5ba   :  { %v1247_v2 = vpop.permute.xlu1 %1246  ;;  %v1251_v40 = vpop.permute.xlu0 %1250 }
 0x5bb   :  { %v1272_v3 = vsel %vm467_vm5, %v1247_v2, 0.0  ;;  %v1278_v5 = vsel %vm467_vm5, %v1251_v40, 0.0 }
 0x5bc   :  { %1273 = vadd.xlane.f32.xlu0 %v1272_v3 }
 0x5be   :  { %v1249_v41 = vpop.permute.xlu1 %1248  ;;  %v1255_v31 = vpop.permute.xlu0 %1254 }
 0x5bf   :  { %v1275_v53 = vsel %vm467_vm5, %v1249_v41, 0.0  ;;  %v1284_v63 = vsel %vm467_vm5, %v1255_v31, 0.0 }
 0x5c0   :  { %1276 = vadd.xlane.f32.xlu0 %v1275_v53 }
 0x5c2   :  { %v1253_v60 = vpop.permute.xlu1 %1252 }
 0x5c3   :  { %v1281_v32 = vsel %vm467_vm5, %v1253_v60, 0.0 }
 0x5c4   :  { %1282 = vadd.xlane.f32.xlu1 %v1281_v32  ;;  %1279 = vadd.xlane.f32.xlu0 %v1278_v5 }
 0x5c6   :  { %v1257_v6 = vpop.permute.xlu1 %1256 }
 0x5c7   :  { %v1287_v47 = vsel %vm467_vm5, %v1257_v6, 0.0 }
 0x5c8   :  { %1288 = vadd.xlane.f32.xlu1 %v1287_v47  ;;  %1285 = vadd.xlane.f32.xlu0 %v1284_v63 }
 0x5db   :  { %v1309_v7 = vpop.permute.xlu1 %1308  ;;  %v1307_v8 = vpop.permute.xlu0 %1306 }
 0x5dc   :  { %v1333_v9 = vsel %vm467_vm5, %v1309_v7, 0.0  ;;  %v1330_v10 = vsel %vm467_vm5, %v1307_v8, 0.0 }
 0x5dd   :  { %1334 = vadd.xlane.f32.xlu1 %v1333_v9  ;;  %1331 = vadd.xlane.f32.xlu0 %v1330_v10 }
 0x5df   :  { %v1311_v11 = vpop.permute.xlu1 %1310  ;;  %v1315_v21 = vpop.permute.xlu0 %1314 }
 0x5e0   :  { %v1336_v20 = vsel %vm467_vm5, %v1311_v11, 0.0  ;;  %v1342_v23 = vsel %vm467_vm5, %v1315_v21, 0.0 }
 0x5e1   :  { %1337 = vadd.xlane.f32.xlu0 %v1336_v20 }
 0x5e3   :  { %v1313_v26 = vpop.permute.xlu1 %1312  ;;  %v1319_v38 = vpop.permute.xlu0 %1318 }
 0x5e4   :  { %v1339_v42 = vsel %vm467_vm5, %v1313_v26, 0.0  ;;  %v1348_v55 = vsel %vm467_vm5, %v1319_v38, 0.0 }
 0x5e5   :  { %1340 = vadd.xlane.f32.xlu0 %v1339_v42 }
 0x5e7   :  { %v1317_v22 = vpop.permute.xlu1 %1316  ;;  %v1371_v45 = vpop.permute.xlu0 %1370 }
 0x5e8   :  { %v1345_v30 = vsel %vm467_vm5, %v1317_v22, 0.0  ;;  %v1394_v48 = vsel %vm467_vm5, %v1371_v45, 0.0 }
 0x5e9   :  { %1346 = vadd.xlane.f32.xlu1 %v1345_v30  ;;  %1343 = vadd.xlane.f32.xlu0 %v1342_v23 }
 0x5eb   :  { %v1321_v1 = vpop.permute.xlu1 %1320  ;;  %v1379_v29 = vpop.permute.xlu0 %1378 }
 0x5ec   :  { %v1351_v44 = vsel %vm467_vm5, %v1321_v1, 0.0  ;;  %v1406_v3 = vsel %vm467_vm5, %v1379_v29, 0.0 }
 0x5ed   :  { %1352 = vadd.xlane.f32.xlu1 %v1351_v44  ;;  %1349 = vadd.xlane.f32.xlu0 %v1348_v55 }
 0x5ef   :  { %v1373_v46 = vpop.permute.xlu1 %1372  ;;  %v1383_v41 = vpop.permute.xlu0 %1382 }
 0x5f0   :  { %v1397_v4 = vsel %vm467_vm5, %v1373_v46, 0.0  ;;  %v1412_v60 = vsel %vm467_vm5, %v1383_v41, 0.0 }
 0x5f1   :  { %1395 = vadd.xlane.f32.xlu0 %v1394_v48 }
 0x5f3   :  { %v1375_v51 = vpop.permute.xlu1 %1374 }
 0x5f4   :  { %v1400_v50 = vsel %vm467_vm5, %v1375_v51, 0.0 }
 0x5f5   :  { %1398 = vadd.xlane.f32.xlu0 %v1397_v4 }
 0x5f7   :  { %v1377_v62 = vpop.permute.xlu1 %1376 }
 0x5f8   :  { %v1403_v13 = vsel %vm467_vm5, %v1377_v62, 0.0 }
 0x5f9   :  { %1404 = vadd.xlane.f32.xlu1 %v1403_v13  ;;  %1401 = vadd.xlane.f32.xlu0 %v1400_v50 }
 0x5fb   :  { %v1381_v2 = vpop.permute.xlu1 %1380 }
 0x5fc   :  { %v1409_v40 = vsel %vm467_vm5, %v1381_v2, 0.0 }
 0x5fd   :  { %1410 = vadd.xlane.f32.xlu1 %v1409_v40  ;;  %1407 = vadd.xlane.f32.xlu0 %v1406_v3 }
 0x5ff   :  { %v1385_v53 = vpop.permute.xlu1 %1384 }
 0x600   :  { %v1415_v5 = vsel %vm467_vm5, %v1385_v53, 0.0 }
 0x601   :  { %1416 = vadd.xlane.f32.xlu1 %v1415_v5  ;;  %1413 = vadd.xlane.f32.xlu0 %v1412_v60 }
 0x641   :  { %v1268_v32 = vpop.xlane.xlu0 %1267  ;;  %v1271_v7 = vpop.xlane.xlu1 %1270 }
 0x642   :  { %v1419_v44 = vsel %vm811_vm6, %v2636_v54, %v1271_v7  ;;  %v1418_v45 = vsel %vm811_vm6, %v2638_v56, %v1268_v32 }
 0x645   :  { %v1274_v31 = vpop.xlane.xlu0 %1273 }
 0x646   :  { %v1420_v46 = vsel %vm811_vm6, %v2642_v58, %v1274_v31 }
 0x649   :  { %v1277_v6 = vpop.xlane.xlu0 %1276 }
 0x64a   :  { %v1421_v48 = vsel %vm811_vm6, %v2640_v57, %v1277_v6 }
 0x64d   :  { %v1280_v63 = vpop.xlane.xlu0 %1279  ;;  %v1283_v9 = vpop.xlane.xlu1 %1282 }
 0x64e   :  { %v1423_v51 = vsel %vm811_vm6, %v2644_v33, %v1283_v9  ;;  %v1422_v4 = vsel %vm811_vm6, %v2646_v25, %v1280_v63 }
 0x651   :  { %v1286_v47 = vpop.xlane.xlu0 %1285  ;;  %v1289_v20 = vpop.xlane.xlu1 %1288 }
 0x652   :  { %v1425_v54 = vsel %vm811_vm6, %v2648_v0, %v1289_v20  ;;  %v1424_v56 = vsel %vm811_vm6, %v2650_v43, %v1286_v47 }
 0x666   :  { %v1332_v8 = vpop.xlane.xlu0 %1331  ;;  %v1335_v26 = vpop.xlane.xlu1 %1334 }
 0x667   :  { %v1427_v29 = vsel %vm820_vm7, %v1419_v44, %v1335_v26  ;;  %v1426_v62 = vsel %vm820_vm7, %v1418_v45, %v1332_v8 }
 0x66a   :  { %v1338_v10 = vpop.xlane.xlu0 %1337 }
 0x66b   :  { %v1428_v50 = vsel %vm820_vm7, %v1420_v46, %v1338_v10 }
 0x66e   :  { %v1341_v11 = vpop.xlane.xlu0 %1340 }
 0x66f   :  { %v1429_v33 = vsel %vm820_vm7, %v1421_v48, %v1341_v11 }
 0x672   :  { %v1344_v21 = vpop.xlane.xlu0 %1343  ;;  %v1347_v38 = vpop.xlane.xlu1 %1346 }
 0x673   :  { %v1431_v25 = vsel %vm820_vm7, %v1423_v51, %v1347_v38  ;;  %v1430_v13 = vsel %vm820_vm7, %v1422_v4, %v1344_v21 }
 0x676   :  { %v1350_v42 = vpop.xlane.xlu0 %1349  ;;  %v1353_v23 = vpop.xlane.xlu1 %1352 }
 0x677   :  { %v1433_v31 = vsel %vm820_vm7, %v1425_v54, %v1353_v23  ;;  %v1432_v6 = vsel %vm820_vm7, %v1424_v56, %v1350_v42 }
 0x67a   :  { %v1396_v22 = vpop.xlane.xlu0 %1395 }
 0x67b   :  { %v1434_v58 = vsel %vm829_vm8, %v1426_v62, %v1396_v22 }
 0x67c   :  { %v1442_v53 = vadd.f32 %v1434_v58, %v2412_v16 }
 0x67e   :  { %v1399_v30 = vpop.xlane.xlu0 %1398 }
 0x67f   :  { %v1435_v57 = vsel %vm829_vm8, %v1427_v29, %v1399_v30 }
 0x680   :  { %v1443_v60 = vadd.f32 %v1435_v57, %v2393_v35 }
 0x682   :  { %v1405_v1 = vpop.xlane.xlu1 %1404  ;;  %v1402_v55 = vpop.xlane.xlu0 %1401  ;;  %v1451_v10 = vsel %vm846_vm9, %v1443_v60, -inf }
 0x683   :  { %v1437_v40 = vsel %vm829_vm8, %v1429_v33, %v1405_v1  ;;  %v1436_v0 = vsel %vm829_vm8, %v1428_v50, %v1402_v55 }
 0x684   :  { %v1445_v63 = vadd.f32 %v1437_v40, %v2415_v19  ;;  %v1444_v47 = vadd.f32 %v1436_v0, %v2409_v15 }
 0x686   :  { %v1411_v2 = vpop.xlane.xlu1 %1410  ;;  %v1408_v3 = vpop.xlane.xlu0 %1407  ;;  %v1453_v21 = vsel %vm846_vm9, %v1445_v63, -inf  ;;  %v1452_v26 = vsel %vm846_vm9, %v1444_v47, -inf }
 0x687   :  { %v1439_v43 = vsel %vm829_vm8, %v1431_v25, %v1411_v2  ;;  %v1438_v41 = vsel %vm829_vm8, %v1430_v13, %v1408_v3 }
 0x688   :  { %v1447_v5 = vadd.f32 %v1439_v43, %v2399_v37  ;;  %v1446_v32 = vadd.f32 %v1438_v41, %v2390_v34  ;;  %v1450_v34 = vsel %vm846_vm9, %v1442_v53, -inf }
 0x68a   :  { %v1456_v7 = vsel %vm846_vm9, %v1447_v5, -inf  ;;  %v1454_v8 = vsel %vm846_vm9, %v1446_v32, -inf  ;;  %v1417_v9 = vpop.xlane.xlu1 %1416  ;;  %v1414_v16 = vpop.xlane.xlu0 %1413 }
 0x68b   :  { %v1441_v35 = vsel %vm829_vm8, %v1433_v31, %v1417_v9  ;;  %v1440_v37 = vsel %vm829_vm8, %v1432_v6, %v1414_v16  ;;  %v1457_v20 = vmax.f32 %v1451_v10, %v1456_v7  ;;  %v1455_v15 = vmax.f32 %v1450_v34, %v1454_v8 }
 0x68c   :  { %v1449_v11 = vadd.f32 %v1441_v35, %v2425_v24  ;;  %v1448_v19 = vadd.f32 %v1440_v37, %v2396_v36 }
 0x68d   :  { %v1462_v30 = vmax.f32 %v1455_v15, %v1457_v20 }
 0x68e   :  { %v1460_v42 = vsel %vm846_vm9, %v1449_v11, -inf  ;;  %v1458_v38 = vsel %vm846_vm9, %v1448_v19, -inf }
 0x68f   :  { %v1461_v22 = vmax.f32 %v1453_v21, %v1460_v42  ;;  %v1459_v23 = vmax.f32 %v1452_v26, %v1458_v38 }
 0x691   :  { %v1463_v1 = vmax.f32 %v1459_v23, %v1461_v22 }
 0x693   :  { %v1464_v55 = vmax.f32 %v1462_v30, %v1463_v1 }
 0x695   :  { %v1465_v44 = vsub.f32 %v1442_v53, %v1464_v55  ;;  %v1466_v45 = vsub.f32 %v1443_v60, %v1464_v55  ;;  %v1467_v24 = vsub.f32 %v1444_v47, %v1464_v55  ;;  %v1468_v46 = vsub.f32 %v1445_v63, %v1464_v55 }
 0x696   :  { %v1469_v36 = vsub.f32 %v1446_v32, %v1464_v55  ;;  %v1470_v29 = vsub.f32 %v1447_v5, %v1464_v55  ;;  %v1471_v54 = vsub.f32 %v1448_v19, %v1464_v55  ;;  %v1472_v58 = vsub.f32 %v1449_v11, %v1464_v55 }
 0x697   :  { %v1473_v48 = vmul.f32 1.442695, %v1465_v44  ;;  %v1475_v51 = vmul.f32 1.442695, %v1466_v45  ;;  %v1477_v4 = vmul.f32 1.442695, %v1467_v24 }
 0x698   :  { %v1479_v62 = vmul.f32 1.442695, %v1468_v46  ;;  %v1481_v56 = vmul.f32 1.442695, %v1469_v36  ;;  %v1483_v57 = vmul.f32 1.442695, %v1470_v29 }
 0x699   :  { %2003 = vpow2.f32 %v1473_v48  ;;  %v1485_v50 = vmul.f32 1.442695, %v1471_v54  ;;  %v1487_v33 = vmul.f32 1.442695, %v1472_v58 }
 0x69a   :  { %2005 = vpow2.f32 %v1475_v51 }
 0x69b   :  { %2007 = vpow2.f32 %v1477_v4 }
 0x69c   :  { %2009 = vpow2.f32 %v1479_v62 }
 0x69d   :  { %2011 = vpow2.f32 %v1481_v56 }
 0x69e   :  { %2013 = vpow2.f32 %v1483_v57 }
 0x69f   :  { %2015 = vpow2.f32 %v1485_v50 }
 0x6a0   :  { %2017 = vpow2.f32 %v1487_v33 }
 0x6a6   :  { %v2004_v25 = vpop.eup %2003 }
 0x6a7   :  { %v2006_v13 = vpop.eup %2005  ;;  %v1489_v2 = vsel %vm846_vm9, %v2004_v25, 0.0 }
 0x6a8   :  { %v2008_v3 = vpop.eup %2007  ;;  %v1490_v40 = vsel %vm846_vm9, %v2006_v13, 0.0 }
 0x6a9   :  { %v2010_v0 = vpop.eup %2009  ;;  %v1491_v43 = vadd.f32 %v1490_v40, %v1489_v2  ;;  %v1492_v41 = vsel %vm846_vm9, %v2008_v3, 0.0 }
 0x6aa   :  { %v2012_v53 = vpop.eup %2011  ;;  %v1494_v5 = vsel %vm846_vm9, %v2010_v0, 0.0 }
 0x6ab   :  { %v1493_v60 = vadd.f32 %v1492_v41, %v1491_v43  ;;  %v2014_v32 = vpop.eup %2013  ;;  %v1496_v6 = vsel %vm846_vm9, %v2012_v53, 0.0 }
 0x6ac   :  { %v2016_v63 = vpop.eup %2015  ;;  %v1498_v7 = vsel %vm846_vm9, %v2014_v32, 0.0 }
 0x6ad   :  { %v1495_v31 = vadd.f32 %v1494_v5, %v1493_v60  ;;  %v2018_v8 = vpop.eup %2017  ;;  %v1500_v16 = vsel %vm846_vm9, %v2016_v63, 0.0 }
 0x6ae   :  { %v1502_v37 = vsel %vm846_vm9, %v2018_v8, 0.0 }
 0x6af   :  { %v1497_v47 = vadd.f32 %v1496_v6, %v1495_v31 }
 0x6b1   :  { %v1499_v9 = vadd.f32 %v1498_v7, %v1497_v47 }
 0x6b3   :  { %v1501_v35 = vadd.f32 %v1500_v16, %v1499_v9 }
 0x6b5   :  { %v1503_v34 = vadd.f32 %v1502_v37, %v1501_v35 }
 0x6b7   :  { %2019 = vrcp.f32 %v1503_v34 }
 0x6c4   :  { %v2020_v10 = vpop.eup %2019 }
 0x6c5   :  { %v1506_v11 = vmul.f32 %v2020_v10, %v2006_v13  ;;  %v1505_v19 = vmul.f32 %v2020_v10, %v2004_v25  ;;  %v1507_v20 = vmul.f32 %v2020_v10, %v2008_v3  ;;  %v1508_v15 = vmul.f32 %v2020_v10, %v2010_v0 }
 0x6c6   :  { %v1509_v21 = vmul.f32 %v2020_v10, %v2012_v53  ;;  %v1510_v26 = vmul.f32 %v2020_v10, %v2014_v32  ;;  %v1511_v42 = vmul.f32 %v2020_v10, %v2016_v63  ;;  %v1512_v38 = vmul.f32 %v2020_v10, %v2018_v8 }
 0x6c7   :  { %1520 = vperm.xlu1 %1930, %v1506_v11   ;;  %1515 = vperm.xlu0 %1928, %v1505_v19  }
 0x6cb   :  { %1525 = vperm.xlu1 %1930, %v1507_v20   ;;  %1931 = vset.pattern.permute.xlu0 %v2113_v39 }
 0x6cc   :  { %1588 = vperm.xlu0 %1931, %v1505_v19  }
 0x6cf   :  { %1530 = vperm.xlu1 %1930, %v1508_v15  }
 0x6d0   :  { %1592 = vperm.xlu0 %1931, %v1506_v11  }
 0x6d3   :  { %1535 = vperm.xlu1 %1930, %v1509_v21  }
 0x6d4   :  { %1596 = vperm.xlu0 %1931, %v1507_v20  }
 0x6d7   :  { %1540 = vperm.xlu1 %1930, %v1510_v26  }
 0x6d8   :  { %1600 = vperm.xlu0 %1931, %v1508_v15  }
 0x6db   :  { %1545 = vperm.xlu1 %1930, %v1511_v42  }
 0x6dc   :  { %1604 = vperm.xlu0 %1931, %v1509_v21  }
 0x6df   :  { %1550 = vperm.xlu1 %1930, %v1512_v38  }
 0x6e0   :  { %1608 = vperm.xlu0 %1931, %v1510_v26  }
 0x6e3   :  { %1932 = vset.pattern.permute.xlu1 %v2115_v59 }
 0x6e4   :  { %1658 = vperm.xlu1 %1932, %v1505_v19   ;;  %1612 = vperm.xlu0 %1931, %v1511_v42  }
 0x6e8   :  { %1662 = vperm.xlu1 %1932, %v1506_v11   ;;  %1616 = vperm.xlu0 %1931, %v1512_v38  }
 0x6ec   :  { %1933 = vset.pattern.permute.xlu1 %v2116_v61  ;;  %1935 = vset.pattern.permute.xlu0 %v2116_v61 }
 0x6ed   :  { %1728 = vperm.xlu1 %1933, %v1505_v19   ;;  %1736 = vperm.xlu0 %1935, %v1507_v20  }
 0x6f1   :  { %1732 = vperm.xlu1 %1933, %v1506_v11  }
 0x6f5   :  { %1934 = vset.pattern.permute.xlu1 %v2115_v59 }
 0x6f6   :  { %1666 = vperm.xlu1 %1934, %v1507_v20  }
 0x6fa   :  { %1670 = vperm.xlu1 %1934, %v1508_v15  }
 0x6fe   :  { %1936 = vset.pattern.permute.xlu1 %v2116_v61 }
 0x6ff   :  { %1740 = vperm.xlu1 %1936, %v1508_v15  }
 0x703   :  { %1937 = vset.pattern.permute.xlu1 %v2115_v59 }
 0x704   :  { %1674 = vperm.xlu1 %1937, %v1509_v21  }
 0x708   :  { %1938 = vset.pattern.permute.xlu1 %v2116_v61 }
 0x709   :  { %1744 = vperm.xlu1 %1938, %v1509_v21  }
 0x70d   :  { %1939 = vset.pattern.permute.xlu1 %v2115_v59 }
 0x70e   :  { %1678 = vperm.xlu1 %1939, %v1510_v26  }
 0x712   :  { %1940 = vset.pattern.permute.xlu1 %v2116_v61 }
 0x713   :  { %1748 = vperm.xlu1 %1940, %v1510_v26  }
 0x717   :  { %1941 = vset.pattern.permute.xlu1 %v2115_v59 }
 0x718   :  { %1682 = vperm.xlu1 %1941, %v1511_v42  }
 0x71c   :  { %1942 = vset.pattern.permute.xlu1 %v2116_v61 }
 0x71d   :  { %1752 = vperm.xlu1 %1942, %v1511_v42  }
 0x721   :  { %1943 = vset.pattern.permute.xlu1 %v2115_v59 }
 0x722   :  { %1686 = vperm.xlu1 %1943, %v1512_v38  }
 0x726   :  { %1944 = vset.pattern.permute.xlu1 %v2116_v61 }
 0x727   :  { %1756 = vperm.xlu1 %1944, %v1512_v38  }
 0x742   :  { %v1521_v39 = vpop.permute.xlu1 %1520  ;;  %v1516_v22 = vpop.permute.xlu0 %1515 }
 0x743   :  { %v1554_v23 = vmul.f32 %v1521_v39, %v2159_v18  ;;  %v1553_v30 = vmul.f32 %v1516_v22, %v2157_v17 }
 0x745   :  { %v1562_v1 = vsel %vm467_vm5, %v1554_v23, 0.0  ;;  %v1561_v55 = vsel %vm467_vm5, %v1553_v30, 0.0 }
 0x746   :  { %v1563_v44 = vadd.f32 %v1562_v1, %v1561_v55  ;;  %v1526_v45 = vpop.permute.xlu1 %1525 }
 0x747   :  { %v1555_v24 = vmul.f32 %v1526_v45, %v2167_v27  ;;  %v1589_v46 = vpop.permute.xlu0 %1588 }
 0x748   :  { %v1619_v3 = vmul.f32 %v1589_v46, %v2157_v17 }
 0x749   :  { %v1564_v59 = vsel %vm467_vm5, %v1555_v24, 0.0 }
 0x74a   :  { %v1565_v36 = vadd.f32 %v1564_v59, %v1563_v44  ;;  %v1531_v61 = vpop.permute.xlu1 %1530  ;;  %v1627_v31 = vsel %vm494_vm3, %v1619_v3, 0.0 }
 0x74b   :  { %v1556_v48 = vmul.f32 %v1531_v61, %v2169_v28  ;;  %v1593_v51 = vpop.permute.xlu0 %1592 }
 0x74c   :  { %v1620_v13 = vmul.f32 %v1593_v51, %v2159_v18 }
 0x74d   :  { %v1566_v4 = vsel %vm467_vm5, %v1556_v48, 0.0 }
 0x74e   :  { %v1567_v29 = vadd.f32 %v1566_v4, %v1565_v36  ;;  %v1536_v62 = vpop.permute.xlu1 %1535  ;;  %v1628_v60 = vsel %vm494_vm3, %v1620_v13, 0.0 }
 0x74f   :  { %v1557_v54 = vmul.f32 %v1536_v62, %v2195_v49  ;;  %v1597_v56 = vpop.permute.xlu0 %1596  ;;  %v1629_v8 = vadd.f32 %v1628_v60, %v1627_v31 }
 0x750   :  { %v1621_v40 = vmul.f32 %v1597_v56, %v2167_v27 }
 0x751   :  { %v1568_v58 = vsel %vm467_vm5, %v1557_v54, 0.0 }
 0x752   :  { %v1569_v57 = vadd.f32 %v1568_v58, %v1567_v29  ;;  %v1541_v50 = vpop.permute.xlu1 %1540  ;;  %v1630_v6 = vsel %vm494_vm3, %v1621_v40, 0.0 }
 0x753   :  { %v1558_v33 = vmul.f32 %v1541_v50, %v2197_v52  ;;  %v1601_v25 = vpop.permute.xlu0 %1600  ;;  %v1631_v34 = vadd.f32 %v1630_v6, %v1629_v8 }
 0x754   :  { %v1622_v5 = vmul.f32 %v1601_v25, %v2169_v28 }
 0x755   :  { %v1570_v2 = vsel %vm467_vm5, %v1558_v33, 0.0 }
 0x756   :  { %v1571_v0 = vadd.f32 %v1570_v2, %v1569_v57  ;;  %v1546_v43 = vpop.permute.xlu1 %1545  ;;  %v1632_v35 = vsel %vm494_vm3, %v1622_v5, 0.0 }
 0x757   :  { %v1559_v41 = vmul.f32 %v1546_v43, %v2217_v12  ;;  %v1605_v53 = vpop.permute.xlu0 %1604  ;;  %v1633_v20 = vadd.f32 %v1632_v35, %v1631_v34 }
 0x758   :  { %v1623_v47 = vmul.f32 %v1605_v53, %v2195_v49 }
 0x759   :  { %v1572_v32 = vsel %vm467_vm5, %v1559_v41, 0.0 }
 0x75a   :  { %v1573_v63 = vadd.f32 %v1572_v32, %v1571_v0  ;;  %v1551_v7 = vpop.permute.xlu1 %1550  ;;  %v1634_v11 = vsel %vm494_vm3, %v1623_v47, 0.0 }
 0x75b   :  { %v1560_v9 = vmul.f32 %v1551_v7, %v2220_v14  ;;  %v1609_v16 = vpop.permute.xlu0 %1608  ;;  %v1635_v38 = vadd.f32 %v1634_v11, %v1633_v20 }
 0x75c   :  { %v1624_v37 = vmul.f32 %v1609_v16, %v2197_v52 }
 0x75d   :  { %v1574_v10 = vsel %vm467_vm5, %v1560_v9, 0.0 }
 0x75e   :  { %v2773_v19 = vadd.f32 %v1574_v10, %v1573_v63  ;;  %v1636_v26 = vsel %vm494_vm3, %v1624_v37, 0.0 }
 0x75f   :  { %v1659_v15 = vpop.permute.xlu1 %1658  ;;  %v1613_v21 = vpop.permute.xlu0 %1612  ;;  %v1637_v22 = vadd.f32 %v1636_v26, %v1635_v38 }
 0x760   :  { %v1625_v42 = vmul.f32 %v1613_v21, %v2217_v12  ;;  %v1689_v56 = vmul.f32 %v1659_v15, %v2157_v17 }
 0x762   :  { %v1638_v39 = vsel %vm494_vm3, %v1625_v42, 0.0  ;;  %v1697_v2 = vsel %vm525_vm4, %v1689_v56, 0.0 }
 0x763   :  { %v1663_v23 = vpop.permute.xlu1 %1662  ;;  %v1617_v30 = vpop.permute.xlu0 %1616  ;;  %v1639_v55 = vadd.f32 %v1638_v39, %v1637_v22 }
 0x764   :  { %v1626_v1 = vmul.f32 %v1617_v30, %v2220_v14  ;;  %v1690_v62 = vmul.f32 %v1663_v23, %v2159_v18 }
 0x766   :  { %v1640_v44 = vsel %vm494_vm3, %v1626_v1, 0.0  ;;  %v1698_v50 = vsel %vm525_vm4, %v1690_v62, 0.0 }
 0x767   :  { %v2780_v45 = vadd.f32 %v1640_v44, %v1639_v55  ;;  %v1699_v43 = vadd.f32 %v1698_v50, %v1697_v2 }
 0x768   :  { %v1729_v24 = vpop.permute.xlu1 %1728  ;;  %v1737_v3 = vpop.permute.xlu0 %1736 }
 0x769   :  { %v1642_v46 = vmul.f32 %v2780_v45, %v2780_v45  ;;  %v1759_v25 = vmul.f32 %v1729_v24, %v2157_v17  ;;  %v1761_v5 = vmul.f32 %v1737_v3, %v2167_v27 }
 0x76b   :  { %1644 = vrot.lane.b32.xlu1 %v1642_v46, %s2112_s1  ;;  %v1767_v60 = vsel %vm556_vm2, %v1759_v25, 0.0  ;;  %v1770_v16 = vsel %vm556_vm2, %v1761_v5, 0.0 }
 0x76c   :  { %v1733_v59 = vpop.permute.xlu1 %1732 }
 0x76d   :  { %v1760_v57 = vmul.f32 %v1733_v59, %v2159_v18  ;;  %v1576_v59 = vmul.f32 %v2773_v19, %v2773_v19 }
 0x76f   :  { %v1768_v41 = vsel %vm556_vm2, %v1760_v57, 0.0 }
 0x770   :  { %v1769_v31 = vadd.f32 %v1768_v41, %v1767_v60 }
 0x771   :  { %v1667_v36 = vpop.permute.xlu1 %1666 }
 0x772   :  { %v1691_v58 = vmul.f32 %v1667_v36, %v2167_v27  ;;  %v1771_v34 = vadd.f32 %v1770_v16, %v1769_v31  ;;  %v1577_v36 = vsel %vm467_vm5, %v1576_v59, 0.0 }
 0x774   :  { %v1700_v40 = vsel %vm525_vm4, %v1691_v58, 0.0 }
 0x775   :  { %v1671_v61 = vpop.permute.xlu1 %1670  ;;  %v1701_v17 = vadd.f32 %v1700_v40, %v1699_v43 }
 0x776   :  { %v1692_v33 = vmul.f32 %v1671_v61, %v2169_v28 }
 0x778   :  { %v1702_v53 = vsel %vm525_vm4, %v1692_v33, 0.0 }
 0x779   :  { %v1703_v7 = vadd.f32 %v1702_v53, %v1701_v17 }
 0x77a   :  { %v1741_v48 = vpop.permute.xlu1 %1740 }
 0x77b   :  { %v1762_v32 = vmul.f32 %v1741_v48, %v2169_v28 }
 0x77d   :  { %v1772_v35 = vsel %vm556_vm2, %v1762_v32, 0.0 }
 0x77e   :  { %v1773_v21 = vadd.f32 %v1772_v35, %v1771_v34 }
 0x77f   :  { %v1675_v51 = vpop.permute.xlu1 %1674 }
 0x780   :  { %v1693_v0 = vmul.f32 %v1675_v51, %v2195_v49 }
 0x782   :  { %v1704_v6 = vsel %vm525_vm4, %v1693_v0, 0.0 }
 0x783   :  { %v1705_v37 = vadd.f32 %v1704_v6, %v1703_v7 }
 0x784   :  { %v1745_v4 = vpop.permute.xlu1 %1744 }
 0x785   :  { %v1763_v8 = vmul.f32 %v1745_v4, %v2195_v49 }
 0x787   :  { %v1774_v10 = vsel %vm556_vm2, %v1763_v8, 0.0 }
 0x788   :  { %v1775_v38 = vadd.f32 %v1774_v10, %v1773_v21 }
 0x789   :  { %v1679_v29 = vpop.permute.xlu1 %1678 }
 0x78a   :  { %v1694_v18 = vmul.f32 %v1679_v29, %v2197_v52 }
 0x78c   :  { %v1706_v9 = vsel %vm525_vm4, %v1694_v18, 0.0 }
 0x78d   :  { %v1707_v11 = vadd.f32 %v1706_v9, %v1705_v37 }
 0x78e   :  { %v1749_v54 = vpop.permute.xlu1 %1748 }
 0x78f   :  { %v1764_v27 = vmul.f32 %v1749_v54, %v2197_v52 }
 0x791   :  { %v1776_v26 = vsel %vm556_vm2, %v1764_v27, 0.0 }
 0x792   :  { %v1777_v23 = vadd.f32 %v1776_v26, %v1775_v38 }
 0x793   :  { %v1683_v13 = vpop.permute.xlu1 %1682 }
 0x794   :  { %v1695_v63 = vmul.f32 %v1683_v13, %v2217_v12 }
 0x796   :  { %v1708_v28 = vsel %vm525_vm4, %v1695_v63, 0.0 }
 0x797   :  { %v1709_v42 = vadd.f32 %v1708_v28, %v1707_v11 }
 0x798   :  { %v1753_v47 = vpop.permute.xlu1 %1752 }
 0x799   :  { %v1765_v20 = vmul.f32 %v1753_v47, %v2217_v12 }
 0x79b   :  { %v1778_v52 = vsel %vm556_vm2, %v1765_v20, 0.0 }
 0x79c   :  { %v1779_v44 = vadd.f32 %v1778_v52, %v1777_v23 }
 0x79d   :  { %v1687_v15 = vpop.permute.xlu1 %1686 }
 0x79e   :  { %v1696_v49 = vmul.f32 %v1687_v15, %v2220_v14 }
 0x7a0   :  { %v1710_v39 = vsel %vm525_vm4, %v1696_v49, 0.0 }
 0x7a1   :  { %v1711_v22 = vadd.f32 %v1710_v39, %v1709_v42 }
 0x7a2   :  { %v1757_v30 = vpop.permute.xlu1 %1756 }
 0x7a3   :  { %v1766_v1 = vmul.f32 %v1757_v30, %v2220_v14  ;;  %v1712_v55 = vmul.f32 %v1711_v22, %v1711_v22 }
 0x7a5   :  { %v1780_v12 = vsel %vm556_vm2, %v1766_v1, 0.0  ;;  %1714 = vrot.lane.b32.xlu1 %v1712_v55, %s2107_s19 }
 0x7a6   :  { %v1781_v24 = vadd.f32 %v1780_v12, %v1779_v44 }
 0x7a8   :  { %v1782_v46 = vmul.f32 %v1781_v24, %v1781_v24 }
 0x7aa   :  { %1784 = vrot.lane.b32.xlu0 %v1782_v46, %s2111_s0 }
 0x7c9   :  { %1578 = vadd.xlane.f32.xlu1 %v1577_v36 }
 0x7dd   :  { %v1645_v61 = vpop.permute.xlu1 %1644 }
 0x7de   :  { %v1647_v48 = vsel %vm467_vm5, %v1645_v61, 0.0 }
 0x7df   :  { %1648 = vadd.xlane.f32.xlu0 %v1647_v48 }
 0x817   :  { %v1715_v14 = vpop.permute.xlu1 %1714 }
 0x818   :  { %v1717_v51 = vsel %vm467_vm5, %v1715_v14, 0.0 }
 0x819   :  { %1718 = vadd.xlane.f32.xlu1 %v1717_v51 }
 0x81c   :  { %v1785_v4 = vpop.permute.xlu0 %1784 }
 0x81d   :  { %v1787_v29 = vsel %vm467_vm5, %v1785_v4, 0.0 }
 0x81e   :  { %1788 = vadd.xlane.f32.xlu0 %v1787_v29 }
 0x852   :  { %v1579_v54 = vpop.xlane.xlu1 %1578 }
 0x853   :  { %v1580_v58 = vadd.f32 1.0, %v1579_v54  ;;  %v1583_v13 = vadd.f32 1e-08, %v1579_v54 }
 0x868   :  { %v1649_v62 = vpop.xlane.xlu0 %1648 }
 0x869   :  { %v1650_v56 = vadd.f32 1.0, %v1649_v62  ;;  %v1653_v57 = vadd.f32 1e-08, %v1649_v62 }
 0x86b   :  { %2021 = vrcp.f32 %v1650_v56 }
 0x86c   :  { %2023 = vrcp.f32 %v1580_v58 }
 0x878   :  { %v2022_v0 = vpop.eup %2021 }
 0x879   :  { %v2024_v43 = vpop.eup %2023  ;;  %v1652_v41 = vmul.f32 %v2022_v0, %v1649_v62 }
 0x87a   :  { %v1582_v18 = vmul.f32 %v2024_v43, %v1579_v54 }
 0x8a2   :  { %v1719_v50 = vpop.xlane.xlu1 %1718 }
 0x8a3   :  { %v1720_v33 = vadd.f32 1.0, %v1719_v50  ;;  %v1723_v25 = vadd.f32 1e-08, %v1719_v50 }
 0x8a5   :  { %2025 = vrcp.f32 %v1720_v33 }
 0x8a6   :  { %2027 = vrsqrt.f32 %v1653_v57 }
 0x8a7   :  { %2029 = vrsqrt.f32 %v1723_v25  ;;  %v1789_v2 = vpop.xlane.xlu0 %1788 }
 0x8a8   :  { %2031 = vrsqrt.f32 %v1583_v13  ;;  %v1790_v3 = vadd.f32 1.0, %v1789_v2  ;;  %v1793_v40 = vadd.f32 1e-08, %v1789_v2 }
 0x8aa   :  { %2033 = vrcp.f32 %v1790_v3 }
 0x8ab   :  { %2035 = vrsqrt.f32 %v1793_v40 }
 0x8b2   :  { %v2026_v53 = vpop.eup %2025 }
 0x8b3   :  { %v2028_v60 = vpop.eup %2027  ;;  %v1722_v5 = vmul.f32 %v2026_v53, %v1719_v50 }
 0x8b4   :  { %v2030_v17 = vpop.eup %2029  ;;  %v1655_v32 = vmul.f32 %v2028_v60, %v1652_v41 }
 0x8b5   :  { %v2032_v31 = vpop.eup %2031  ;;  %v1725_v6 = vmul.f32 %v2030_v17, %v1722_v5 }
 0x8b6   :  { %v1585_v63 = vmul.f32 %v2032_v31, %v1582_v18  ;;  %v1656_v7 = vmul.f32 %v1655_v32, %v2780_v45 }
 0x8b7   :  { %v2034_v47 = vpop.eup %2033  ;;  %v1726_v16 = vmul.f32 %v1725_v6, %v1711_v22 }
 0x8b8   :  { %v1792_v8 = vmul.f32 %v2034_v47, %v1789_v2  ;;  %v2036_v9 = vpop.eup %2035  ;;  %v1586_v35 = vmul.f32 %v1585_v63, %v2773_v19 }
 0x8ba   :  { %v1795_v37 = vmul.f32 %v2036_v9, %v1792_v8  ;;  %v1798_v34 = vsel %vm1797_vm10, %v1586_v35, %v1656_v7 }
 0x8bb   :  { %v1800_v28 = vsel %vm1799_vm11, %v1798_v34, %v1726_v16 }
 0x8bc   :  { %v1796_v27 = vmul.f32 %v1795_v37, %v1781_v24 }
 0x8be   :  { %v1802_v10 = vsel %vm1801_vm12, %v1800_v28, %v1796_v27 }
 0x8bf   :  { %1803 = vst [vmem:[#allocation7] sm:$0x3] %v1802_v10 }
 0x8c0   :  { %2088 = shalt.err (!%p2085_p0)
}
 0x8c1   :  { %1813 = dma.vmem_to_hbm [thread:$0]  %s1811_s24, 32, %s2832_s2, [#allocation4]  }
 0x8c2   :  { %2101 = dma.done.wait [#allocation4], 32  }
 0x8c3   :  { %2102 = vsyncadd [#allocation4], 4294967264 }
 0x8c4   :  { %1817 = vsyncpa [#allocation3], 1 }
 0x8c5   :  { %1818 = vsyncpa [#allocation6], 1 }
 0x8c6   :  { %1819 = vsyncpa [#allocation4], 1 }

</bundles_post_ra>
